<compile_context>
chip_gen: v7x
topology: tpu7x:2x2x1
jax: 0.10.0
libtpu: 0.0.40
codegen_flags: <defaults>
</compile_context>

<pallas_src>
import math

import jax
import jax.numpy as jnp
import numpy as np
from jax.experimental import pallas as pl
from jax.experimental.pallas import tpu as pltpu

# ----- small, CLIP-text-encoder-shaped config -----
B = 2            # number of prompts (batch)
S = 8            # context length
D = 32           # transformer width
H = 4            # attention heads
DH = D // H      # head dim
L = 2            # transformer layers
E = 16           # text_projection output dim
FF = 4 * D       # MLP hidden (QuickGELU)
LN_EPS = 1e-5
BS = B * S       # batch folded into the matmul M dimension
NEG = -1e9       # finite mask sentinel (avoids inf - inf = NaN risk)
APPROX_RECIP = True   # softmax 1/sum on the EUP (approx)

LANES = 128
assert D % H == 0
assert FF <= LANES and 3 * D <= LANES
assert S & (S - 1) == 0, "in-kernel block mask uses a power-of-two row-block trick"

# ----- packed-slab row layout (all offsets static Python ints) -----
# bf16 weight slab, per layer (rows x 128 lanes):
#   [0*D:1*D] wq   [1*D:2*D] wk   [2*D:3*D] wv   [3*D:4*D] wo
#   [4*D:5*D] w1 (full 128 lanes)   [5*D:9*D] w2 (lanes 0:D)
W_ROWS = 9 * D                                   # 288

# f32 small-param slab (rows x 128 lanes):
ROW_POS = 0                                      # pos: rows 0:S, lanes 0:D
ROW_LAYER0 = S                                   # first layer's bias/LN block
ROWS_PER_LAYER = 16                              # 10 used + pad to keep 8-alignment
#   per layer: +0 ln1g +1 ln1b +2 bq +3 bk +4 bv +5 bo +6 ln2g +7 ln2b +8 b1 +9 b2
ROW_LNF = ROW_LAYER0 + L * ROWS_PER_LAYER        # ln_final gamma / beta (2 rows)
ROW_PROJ = ((ROW_LNF + 2 + 7) // 8) * 8          # text_projection, 8-aligned
SP_ROWS = ROW_PROJ + D


# --------------------------------------------------------------------------
# Fused Pallas kernel
# --------------------------------------------------------------------------
def _ln(v, g, b):
    mu = jnp.mean(v, axis=-1, keepdims=True)
    var = jnp.mean((v - mu) ** 2, axis=-1, keepdims=True)
    return (v - mu) * jax.lax.rsqrt(var + LN_EPS) * g + b


def text_encoder_kernel(prompts_ref, sp_ref, w_ref, eot_ref, out_ref, ctx_ref):
    """Entire TextEncoder forward: activations stay VMEM/vreg-resident."""
    f32, bf16 = jnp.float32, jnp.bfloat16

    # --- prologue: positional add, fold batch into rows: (B,S,D)+(S,D) -> (B*S,D)
    pos = sp_ref[ROW_POS:ROW_POS + S, 0:D]                    # (S, D) f32
    x = (prompts_ref[...] + pos).reshape(BS, D)               # (BS, D) f32

    # --- block-diagonal causal mask, built once in-kernel (finite sentinel)
    row = jax.lax.broadcasted_iota(jnp.int32, (BS, BS), 0)
    col = jax.lax.broadcasted_iota(jnp.int32, (BS, BS), 1)
    row_blk = jnp.bitwise_and(row, jnp.int32(~(S - 1)))       # start of this row's batch block
    mask = jnp.where((col <= row) & (col >= row_blk), 0.0, NEG).astype(f32)

    scale = 1.0 / math.sqrt(DH)

    for l in range(L):                                        # static unroll, L=2
        r = ROW_LAYER0 + l * ROWS_PER_LAYER

        # ---- multi-head self-attention, pre-LN ----
        h1 = _ln(x, sp_ref[r + 0:r + 1, 0:D], sp_ref[r + 1:r + 2, 0:D])
        h1b = h1.astype(bf16)
        q = jnp.dot(h1b, w_ref[l, 0 * D:1 * D, 0:D],
                    preferred_element_type=f32) + sp_ref[r + 2:r + 3, 0:D]
        k = jnp.dot(h1b, w_ref[l, 1 * D:2 * D, 0:D],
                    preferred_element_type=f32) + sp_ref[r + 3:r + 4, 0:D]
        v = jnp.dot(h1b, w_ref[l, 2 * D:3 * D, 0:D],
                    preferred_element_type=f32) + sp_ref[r + 4:r + 5, 0:D]
        qb = (q * scale).astype(bf16)                         # fold 1/sqrt(DH) in f32
        kb = k.astype(bf16)
        vb = v.astype(bf16)

        for hh in range(H):                                   # static unroll over heads
            sl = slice(hh * DH, (hh + 1) * DH)
            # q @ k^T without materializing a transpose (contract last dims)
            s = jax.lax.dot_general(qb[:, sl], kb[:, sl], (((1,), (1,)), ((), ())),
                                    preferred_element_type=f32)
            s = s + mask                                      # (BS, BS)
            # no row-max subtraction: scores are O(1), masked lanes underflow to 0
            p = jnp.exp(s)
            p = p * pl.reciprocal(jnp.sum(p, axis=-1, keepdims=True),
                                  approx=APPROX_RECIP)
            # head context -> VMEM scratch at static lane offset (no per-head Wo fold)
            ctx_ref[:, sl] = jnp.dot(p.astype(bf16), vb[:, sl],
                                     preferred_element_type=f32)

        attn = jnp.dot(ctx_ref[...].astype(bf16), w_ref[l, 3 * D:4 * D, 0:D],
                       preferred_element_type=f32)            # ONE Wo matmul per layer
        x = x + attn + sp_ref[r + 5:r + 6, 0:D]

        # ---- MLP with QuickGELU (as in CLIP) ----
        h2 = _ln(x, sp_ref[r + 6:r + 7, 0:D], sp_ref[r + 7:r + 8, 0:D])
        m = jnp.dot(h2.astype(bf16), w_ref[l, 4 * D:5 * D, 0:FF],
                    preferred_element_type=f32) + sp_ref[r + 8:r + 9, 0:FF]
        m = m * jax.nn.sigmoid(1.702 * m)
        x = x + jnp.dot(m.astype(bf16), w_ref[l, 5 * D:9 * D, 0:D],
                        preferred_element_type=f32) + sp_ref[r + 9:r + 10, 0:D]

    # --- epilogue: EOT rows via SMEM indices + dynamic sublane reads, ln_final, proj
    ctx_ref[...] = x                                          # reuse scratch for row gather
    rows = [ctx_ref[pl.ds(b * S + eot_ref[b], 1), :] for b in range(B)]
    eot_x = jnp.concatenate(rows, axis=0)                     # (B, D)
    eot_x = _ln(eot_x, sp_ref[ROW_LNF:ROW_LNF + 1, 0:D],
                sp_ref[ROW_LNF + 1:ROW_LNF + 2, 0:D])
    out_ref[...] = jnp.dot(eot_x, sp_ref[ROW_PROJ:ROW_PROJ + D, 0:E],
                           preferred_element_type=f32)        # (B, E)


# --------------------------------------------------------------------------
# Wrapper: pack params into 2 slabs (offline-cheap), single pallas_call, no grid
# --------------------------------------------------------------------------
def _pack_weights(params):
    """All matmul weights -> one (L, 9*D, 128) bf16 slab, sublane-major layout."""
    blocks = []
    for lp in params["layers"]:
        wq, wk, wv = jnp.split(lp["wqkv"], 3, axis=1)         # each (D, D)
        blk = jnp.zeros((W_ROWS, LANES), jnp.float32)
        blk = blk.at[0 * D:1 * D, 0:D].set(wq)
        blk = blk.at[1 * D:2 * D, 0:D].set(wk)
        blk = blk.at[2 * D:3 * D, 0:D].set(wv)
        blk = blk.at[3 * D:4 * D, 0:D].set(lp["wo"])
        blk = blk.at[4 * D:5 * D, 0:FF].set(lp["w1"])
        blk = blk.at[5 * D:9 * D, 0:D].set(lp["w2"])
        blocks.append(blk)
    return jnp.stack(blocks, axis=0).astype(jnp.bfloat16)


def _pack_small(params):
    """pos, LN params, biases, ln_final, proj -> one (SP_ROWS, 128) f32 slab."""
    sp = jnp.zeros((SP_ROWS, LANES), jnp.float32)
    sp = sp.at[ROW_POS:ROW_POS + S, 0:D].set(params["pos"])
    for l, lp in enumerate(params["layers"]):
        r = ROW_LAYER0 + l * ROWS_PER_LAYER
        bq, bk, bv = jnp.split(lp["bqkv"][0], 3)
        sp = sp.at[r + 0, 0:D].set(lp["ln1g"][0])
        sp = sp.at[r + 1, 0:D].set(lp["ln1b"][0])
        sp = sp.at[r + 2, 0:D].set(bq)
        sp = sp.at[r + 3, 0:D].set(bk)
        sp = sp.at[r + 4, 0:D].set(bv)
        sp = sp.at[r + 5, 0:D].set(lp["bo"][0])
        sp = sp.at[r + 6, 0:D].set(lp["ln2g"][0])
        sp = sp.at[r + 7, 0:D].set(lp["ln2b"][0])
        sp = sp.at[r + 8, 0:FF].set(lp["b1"][0])
        sp = sp.at[r + 9, 0:D].set(lp["b2"][0])
    sp = sp.at[ROW_LNF, 0:D].set(params["ln_final_g"][0])
    sp = sp.at[ROW_LNF + 1, 0:D].set(params["ln_final_b"][0])
    sp = sp.at[ROW_PROJ:ROW_PROJ + D, 0:E].set(params["proj"])
    return sp


def text_encoder_forward(prompts, tokenized_prompts, params):
    # EOT row index inside the folded (B*S, D) activation matrix.
    eot_rows = (jnp.arange(B, dtype=jnp.int32) * S
                + jnp.argmax(tokenized_prompts, axis=-1).astype(jnp.int32))
    # In production these two slabs are packed once offline; here they are traced
    # into the jit and constant-folded around the single pallas_call.
    sp = _pack_small(params)
    w = _pack_weights(params)

    return pl.pallas_call(
        text_encoder_kernel,
        out_shape=jax.ShapeDtypeStruct((B, E), jnp.float32),
        in_specs=[
            pl.BlockSpec(memory_space=pltpu.MemorySpace.VMEM),   # prompts
            pl.BlockSpec(memory_space=pltpu.MemorySpace.VMEM),   # small-param slab (f32)
            pl.BlockSpec(memory_space=pltpu.MemorySpace.VMEM),   # weight slab (bf16)
            pl.BlockSpec(memory_space=pltpu.MemorySpace.SMEM),   # EOT row indices
        ],
        out_specs=pl.BlockSpec(memory_space=pltpu.MemorySpace.VMEM),
        scratch_shapes=[pltpu.VMEM((BS, D), jnp.float32)],        # head ctx / final-x buffer
        # grid=() -> single invocation on one TensorCore (right call at this size;
        # at real CLIP sizes switch to a layer grid + weight BlockSpec index_map).
    )(prompts, sp, w, eot_rows)


# --------------------------------------------------------------------------
# Deterministic parameter init (shapes implied by the module's __init__)
# --------------------------------------------------------------------------
def init_params(key):
    keys = jax.random.split(key, 2 + L)
    params = {
        "pos": 0.01 * jax.random.normal(keys[0], (S, D), jnp.float32),
        "ln_final_g": jnp.ones((1, D), jnp.float32),
        "ln_final_b": jnp.zeros((1, D), jnp.float32),
        "proj": 0.05 * jax.random.normal(keys[1], (D, E), jnp.float32),
        "layers": [],
    }
    for l in range(L):
        lk = jax.random.split(keys[2 + l], 8)
        params["layers"].append(dict(
            ln1g=jnp.ones((1, D), jnp.float32),
            ln1b=jnp.zeros((1, D), jnp.float32),
            wqkv=0.05 * jax.random.normal(lk[0], (D, 3 * D), jnp.float32),
            bqkv=0.01 * jax.random.normal(lk[1], (1, 3 * D), jnp.float32),
            wo=0.05 * jax.random.normal(lk[2], (D, D), jnp.float32),
            bo=0.01 * jax.random.normal(lk[3], (1, D), jnp.float32),
            ln2g=jnp.ones((1, D), jnp.float32),
            ln2b=jnp.zeros((1, D), jnp.float32),
            w1=0.05 * jax.random.normal(lk[4], (D, FF), jnp.float32),
            b1=0.01 * jax.random.normal(lk[5], (1, FF), jnp.float32),
            w2=0.05 * jax.random.normal(lk[6], (FF, D), jnp.float32),
            b2=0.01 * jax.random.normal(lk[7], (1, D), jnp.float32),
        ))
    return params


# --------------------------------------------------------------------------
# Pure-JAX f32 reference (mirrors the PyTorch forward semantics)
# --------------------------------------------------------------------------
def _ref_ln(v, g, b):
    mu = jnp.mean(v, axis=-1, keepdims=True)
    var = jnp.mean((v - mu) ** 2, axis=-1, keepdims=True)
    return (v - mu) * jax.lax.rsqrt(var + LN_EPS) * g + b


def reference_forward(prompts, tokenized_prompts, params):
    mask = jnp.triu(jnp.full((S, S), -jnp.inf, jnp.float32), k=1)
    x = prompts + params["pos"]
    for lp in params["layers"]:
        h = _ref_ln(x, lp["ln1g"][0], lp["ln1b"][0])
        qkv = h @ lp["wqkv"] + lp["bqkv"][0]
        q, k, v = jnp.split(qkv, 3, axis=-1)
        sh = lambda t: t.reshape(B, S, H, DH).transpose(0, 2, 1, 3)
        qh, kh, vh = sh(q), sh(k), sh(v)
        s = jnp.einsum("bhqd,bhkd->bhqk", qh, kh) / math.sqrt(DH) + mask
        p = jax.nn.softmax(s, axis=-1)
        o = jnp.einsum("bhqk,bhkd->bhqd", p, vh).transpose(0, 2, 1, 3).reshape(B, S, D)
        x = x + o @ lp["wo"] + lp["bo"][0]
        h2 = _ref_ln(x, lp["ln2g"][0], lp["ln2b"][0])
        m = h2 @ lp["w1"] + lp["b1"][0]
        m = m * jax.nn.sigmoid(1.702 * m)
        x = x + m @ lp["w2"] + lp["b2"][0]
    x = _ref_ln(x, params["ln_final_g"][0], params["ln_final_b"][0])
    eot = jnp.argmax(tokenized_prompts, axis=-1)
    return x[jnp.arange(B), eot] @ params["proj"]


# --------------------------------------------------------------------------
if __name__ == "__main__":
    key = jax.random.PRNGKey(0)
    k_prompts, k_tok, k_params = jax.random.split(key, 3)

    prompts = jax.random.normal(k_prompts, (B, S, D), jnp.float32)
    tokenized_prompts = jax.random.randint(k_tok, (B, S), 1, 100, jnp.int32)
    eot_pos = jnp.array([S - 3, S - 1], jnp.int32)              # unique max = EOT token
    tokenized_prompts = tokenized_prompts.at[jnp.arange(B), eot_pos].set(1000)

    params = init_params(k_params)

    fwd = jax.jit(text_encoder_forward)
    out = jax.block_until_ready(fwd(prompts, tokenized_prompts, params))

    ref = reference_forward(prompts, tokenized_prompts, params)
    # Tolerance reflects the deliberate numerics: bf16 MXU operands (dominant,
    # ~1% relative through 2 layers) + EUP approximate reciprocal in softmax.
    # Structural errors (mask/head/layer/gather bugs) would be orders larger.
    np.testing.assert_allclose(np.asarray(out), np.asarray(ref), atol=3e-2, rtol=3e-2)

    print("KERNEL_OK")
</pallas_src>

<mosaic_0001>
module attributes {stable_mosaic.version = 11 : i64} {
  func.func @text_encoder_kernel(%arg0: memref<2x8x32xf32, #tpu.memory_space<vmem>>, %arg1: memref<80x128xf32, #tpu.memory_space<vmem>>, %arg2: memref<2x288x128xbf16, #tpu.memory_space<vmem>>, %arg3: memref<2xi32, #tpu.memory_space<smem>>, %arg4: memref<2x16xf32, #tpu.memory_space<vmem>>, %arg5: memref<16x32xf32, #tpu.memory_space<vmem>>) attributes {dimension_semantics = [], scalar_prefetch = 0 : i64, scratch_operands = 1 : i64, tpu.core_type = #tpu.core_type<tc>} {
    %c0 = arith.constant 0 : index
    %c0_0 = arith.constant 0 : index
    %0 = vector.load %arg1[%c0, %c0_0] : memref<80x128xf32, #tpu.memory_space<vmem>>, vector<8x32xf32>
    %c0_1 = arith.constant 0 : index
    %c0_2 = arith.constant 0 : index
    %c0_3 = arith.constant 0 : index
    %1 = vector.load %arg0[%c0_1, %c0_2, %c0_3] : memref<2x8x32xf32, #tpu.memory_space<vmem>>, vector<2x8x32xf32>
    %2 = vector.shape_cast %0 : vector<8x32xf32> to vector<1x8x32xf32>
    %3 = vector.broadcast %2 : vector<1x8x32xf32> to vector<2x8x32xf32>
    %4 = arith.addf %1, %3 : vector<2x8x32xf32>
    %5 = vector.shape_cast %4 : vector<2x8x32xf32> to vector<16x32xf32>
    %6 = tpu.iota {dimensions = array<i32: 0>} : vector<16x16xi32>
    %7 = tpu.iota {dimensions = array<i32: 1>} : vector<16x16xi32>
    %c-8_i32 = arith.constant -8 : i32
    %8 = vector.broadcast %c-8_i32 : i32 to vector<16x16xi32>
    %9 = arith.andi %6, %8 : vector<16x16xi32>
    %10 = arith.cmpi sle, %7, %6 : vector<16x16xi32>
    %11 = arith.cmpi sge, %7, %9 : vector<16x16xi32>
    %12 = arith.andi %10, %11 : vector<16x16xi1>
    %cst = arith.constant 0.000000e+00 : f32
    %cst_4 = arith.constant -1.000000e+09 : f32
    %13 = vector.broadcast %cst : f32 to vector<16x16xf32>
    %14 = vector.broadcast %cst_4 : f32 to vector<16x16xf32>
    %15 = arith.select %12, %13, %14 : vector<16x16xi1>, vector<16x16xf32>
    %c8 = arith.constant 8 : index
    %c0_5 = arith.constant 0 : index
    %16 = vector.load %arg1[%c8, %c0_5] : memref<80x128xf32, #tpu.memory_space<vmem>>, vector<1x32xf32>
    %c9 = arith.constant 9 : index
    %c0_6 = arith.constant 0 : index
    %17 = vector.load %arg1[%c9, %c0_6] : memref<80x128xf32, #tpu.memory_space<vmem>>, vector<1x32xf32>
    %cst_7 = arith.constant dense<0.000000e+00> : vector<16xf32>
    %18 = vector.multi_reduction <add>, %5, %cst_7 [1] : vector<16x32xf32> to vector<16xf32>
    %19 = vector.shape_cast %18 : vector<16xf32> to vector<16x1xf32>
    %cst_8 = arith.constant 3.200000e+01 : f32
    %20 = vector.broadcast %cst_8 : f32 to vector<16x1xf32>
    %21 = arith.divf %19, %20 : vector<16x1xf32>
    %22 = vector.broadcast %21 : vector<16x1xf32> to vector<16x32xf32>
    %23 = arith.subf %5, %22 : vector<16x32xf32>
    %24 = arith.mulf %23, %23 : vector<16x32xf32>
    %cst_9 = arith.constant dense<0.000000e+00> : vector<16xf32>
    %25 = vector.multi_reduction <add>, %24, %cst_9 [1] : vector<16x32xf32> to vector<16xf32>
    %26 = vector.shape_cast %25 : vector<16xf32> to vector<16x1xf32>
    %cst_10 = arith.constant 3.200000e+01 : f32
    %27 = vector.broadcast %cst_10 : f32 to vector<16x1xf32>
    %28 = arith.divf %26, %27 : vector<16x1xf32>
    %29 = vector.broadcast %21 : vector<16x1xf32> to vector<16x32xf32>
    %30 = arith.subf %5, %29 : vector<16x32xf32>
    %cst_11 = arith.constant 9.99999974E-6 : f32
    %31 = vector.broadcast %cst_11 : f32 to vector<16x1xf32>
    %32 = arith.addf %28, %31 : vector<16x1xf32>
    %33 = math.rsqrt %32 : vector<16x1xf32>
    %34 = vector.broadcast %33 : vector<16x1xf32> to vector<16x32xf32>
    %35 = arith.mulf %30, %34 : vector<16x32xf32>
    %36 = vector.broadcast %16 : vector<1x32xf32> to vector<16x32xf32>
    %37 = arith.mulf %35, %36 : vector<16x32xf32>
    %38 = vector.broadcast %17 : vector<1x32xf32> to vector<16x32xf32>
    %39 = arith.addf %37, %38 : vector<16x32xf32>
    %40 = arith.truncf %39 : vector<16x32xf32> to vector<16x32xbf16>
    %c0_12 = arith.constant 0 : index
    %c0_13 = arith.constant 0 : index
    %c0_14 = arith.constant 0 : index
    %41 = vector.load %arg2[%c0_12, %c0_13, %c0_14] : memref<2x288x128xbf16, #tpu.memory_space<vmem>>, vector<1x32x32xbf16>
    %42 = vector.shape_cast %41 : vector<1x32x32xbf16> to vector<32x32xbf16>
    %cst_15 = arith.constant dense<0.000000e+00> : vector<16x32xf32>
    %43 = tpu.matmul %40, %42, %cst_15 {dimension_numbers = #tpu.dot_dimension_numbers<[1], [0], [0], [1], [0, 0, 1, 1], [], []>} : vector<16x32xbf16>, vector<32x32xbf16>, vector<16x32xf32> -> vector<16x32xf32>
    %c10 = arith.constant 10 : index
    %c0_16 = arith.constant 0 : index
    %44 = vector.load %arg1[%c10, %c0_16] : memref<80x128xf32, #tpu.memory_space<vmem>>, vector<1x32xf32>
    %45 = vector.broadcast %44 : vector<1x32xf32> to vector<16x32xf32>
    %46 = arith.addf %43, %45 : vector<16x32xf32>
    %c0_17 = arith.constant 0 : index
    %c32 = arith.constant 32 : index
    %c0_18 = arith.constant 0 : index
    %47 = vector.load %arg2[%c0_17, %c32, %c0_18] : memref<2x288x128xbf16, #tpu.memory_space<vmem>>, vector<1x32x32xbf16>
    %48 = vector.shape_cast %47 : vector<1x32x32xbf16> to vector<32x32xbf16>
    %cst_19 = arith.constant dense<0.000000e+00> : vector<16x32xf32>
    %49 = tpu.matmul %40, %48, %cst_19 {dimension_numbers = #tpu.dot_dimension_numbers<[1], [0], [0], [1], [0, 0, 1, 1], [], []>} : vector<16x32xbf16>, vector<32x32xbf16>, vector<16x32xf32> -> vector<16x32xf32>
    %c11 = arith.constant 11 : index
    %c0_20 = arith.constant 0 : index
    %50 = vector.load %arg1[%c11, %c0_20] : memref<80x128xf32, #tpu.memory_space<vmem>>, vector<1x32xf32>
    %51 = vector.broadcast %50 : vector<1x32xf32> to vector<16x32xf32>
    %52 = arith.addf %49, %51 : vector<16x32xf32>
    %c0_21 = arith.constant 0 : index
    %c64 = arith.constant 64 : index
    %c0_22 = arith.constant 0 : index
    %53 = vector.load %arg2[%c0_21, %c64, %c0_22] : memref<2x288x128xbf16, #tpu.memory_space<vmem>>, vector<1x32x32xbf16>
    %54 = vector.shape_cast %53 : vector<1x32x32xbf16> to vector<32x32xbf16>
    %cst_23 = arith.constant dense<0.000000e+00> : vector<16x32xf32>
    %55 = tpu.matmul %40, %54, %cst_23 {dimension_numbers = #tpu.dot_dimension_numbers<[1], [0], [0], [1], [0, 0, 1, 1], [], []>} : vector<16x32xbf16>, vector<32x32xbf16>, vector<16x32xf32> -> vector<16x32xf32>
    %c12 = arith.constant 12 : index
    %c0_24 = arith.constant 0 : index
    %56 = vector.load %arg1[%c12, %c0_24] : memref<80x128xf32, #tpu.memory_space<vmem>>, vector<1x32xf32>
    %57 = vector.broadcast %56 : vector<1x32xf32> to vector<16x32xf32>
    %58 = arith.addf %55, %57 : vector<16x32xf32>
    %cst_25 = arith.constant 0.353553385 : f32
    %59 = vector.broadcast %cst_25 : f32 to vector<16x32xf32>
    %60 = arith.mulf %46, %59 : vector<16x32xf32>
    %61 = arith.truncf %60 : vector<16x32xf32> to vector<16x32xbf16>
    %62 = arith.truncf %52 : vector<16x32xf32> to vector<16x32xbf16>
    %63 = arith.truncf %58 : vector<16x32xf32> to vector<16x32xbf16>
    %64 = vector.extract_strided_slice %61 {offsets = [0, 0], sizes = [16, 8], strides = [1, 1]} : vector<16x32xbf16> to vector<16x8xbf16>
    %65 = vector.extract_strided_slice %62 {offsets = [0, 0], sizes = [16, 8], strides = [1, 1]} : vector<16x32xbf16> to vector<16x8xbf16>
    %cst_26 = arith.constant dense<0.000000e+00> : vector<16x16xf32>
    %66 = tpu.matmul %64, %65, %cst_26 {dimension_numbers = #tpu.dot_dimension_numbers<[1], [1], [0], [0], [0, 0, 1, 0], [], []>} : vector<16x8xbf16>, vector<16x8xbf16>, vector<16x16xf32> -> vector<16x16xf32>
    %67 = arith.addf %66, %15 : vector<16x16xf32>
    %68 = math.exp %67 : vector<16x16xf32>
    %cst_27 = arith.constant dense<0.000000e+00> : vector<16xf32>
    %69 = vector.multi_reduction <add>, %68, %cst_27 [1] : vector<16x16xf32> to vector<16xf32>
    %70 = vector.shape_cast %69 : vector<16xf32> to vector<16x1xf32>
    %71 = tpu.reciprocal %70 {approx = true} : vector<16x1xf32> -> vector<16x1xf32>
    %72 = vector.broadcast %71 : vector<16x1xf32> to vector<16x16xf32>
    %73 = arith.mulf %68, %72 : vector<16x16xf32>
    %74 = arith.truncf %73 : vector<16x16xf32> to vector<16x16xbf16>
    %75 = vector.extract_strided_slice %63 {offsets = [0, 0], sizes = [16, 8], strides = [1, 1]} : vector<16x32xbf16> to vector<16x8xbf16>
    %cst_28 = arith.constant dense<0.000000e+00> : vector<16x8xf32>
    %76 = tpu.matmul %74, %75, %cst_28 {dimension_numbers = #tpu.dot_dimension_numbers<[1], [0], [0], [1], [0, 0, 1, 1], [], []>} : vector<16x16xbf16>, vector<16x8xbf16>, vector<16x8xf32> -> vector<16x8xf32>
    %c0_29 = arith.constant 0 : index
    %c0_30 = arith.constant 0 : index
    %77 = vector.load %arg5[%c0_29, %c0_30] : memref<16x32xf32, #tpu.memory_space<vmem>>, vector<16x8xf32>
    tpu.vector_store %arg5[%c0_29, %c0_30], %76 {strides = array<i32>} : memref<16x32xf32, #tpu.memory_space<vmem>>, vector<16x8xf32>,
    %78 = vector.extract_strided_slice %61 {offsets = [0, 8], sizes = [16, 8], strides = [1, 1]} : vector<16x32xbf16> to vector<16x8xbf16>
    %79 = vector.extract_strided_slice %62 {offsets = [0, 8], sizes = [16, 8], strides = [1, 1]} : vector<16x32xbf16> to vector<16x8xbf16>
    %cst_31 = arith.constant dense<0.000000e+00> : vector<16x16xf32>
    %80 = tpu.matmul %78, %79, %cst_31 {dimension_numbers = #tpu.dot_dimension_numbers<[1], [1], [0], [0], [0, 0, 1, 0], [], []>} : vector<16x8xbf16>, vector<16x8xbf16>, vector<16x16xf32> -> vector<16x16xf32>
    %81 = arith.addf %80, %15 : vector<16x16xf32>
    %82 = math.exp %81 : vector<16x16xf32>
    %cst_32 = arith.constant dense<0.000000e+00> : vector<16xf32>
    %83 = vector.multi_reduction <add>, %82, %cst_32 [1] : vector<16x16xf32> to vector<16xf32>
    %84 = vector.shape_cast %83 : vector<16xf32> to vector<16x1xf32>
    %85 = tpu.reciprocal %84 {approx = true} : vector<16x1xf32> -> vector<16x1xf32>
    %86 = vector.broadcast %85 : vector<16x1xf32> to vector<16x16xf32>
    %87 = arith.mulf %82, %86 : vector<16x16xf32>
    %88 = arith.truncf %87 : vector<16x16xf32> to vector<16x16xbf16>
    %89 = vector.extract_strided_slice %63 {offsets = [0, 8], sizes = [16, 8], strides = [1, 1]} : vector<16x32xbf16> to vector<16x8xbf16>
    %cst_33 = arith.constant dense<0.000000e+00> : vector<16x8xf32>
    %90 = tpu.matmul %88, %89, %cst_33 {dimension_numbers = #tpu.dot_dimension_numbers<[1], [0], [0], [1], [0, 0, 1, 1], [], []>} : vector<16x16xbf16>, vector<16x8xbf16>, vector<16x8xf32> -> vector<16x8xf32>
    %c0_34 = arith.constant 0 : index
    %c8_35 = arith.constant 8 : index
    %91 = vector.load %arg5[%c0_34, %c8_35] : memref<16x32xf32, #tpu.memory_space<vmem>>, vector<16x8xf32>
    tpu.vector_store %arg5[%c0_34, %c8_35], %90 {strides = array<i32>} : memref<16x32xf32, #tpu.memory_space<vmem>>, vector<16x8xf32>,
    %92 = vector.extract_strided_slice %61 {offsets = [0, 16], sizes = [16, 8], strides = [1, 1]} : vector<16x32xbf16> to vector<16x8xbf16>
    %93 = vector.extract_strided_slice %62 {offsets = [0, 16], sizes = [16, 8], strides = [1, 1]} : vector<16x32xbf16> to vector<16x8xbf16>
    %cst_36 = arith.constant dense<0.000000e+00> : vector<16x16xf32>
    %94 = tpu.matmul %92, %93, %cst_36 {dimension_numbers = #tpu.dot_dimension_numbers<[1], [1], [0], [0], [0, 0, 1, 0], [], []>} : vector<16x8xbf16>, vector<16x8xbf16>, vector<16x16xf32> -> vector<16x16xf32>
    %95 = arith.addf %94, %15 : vector<16x16xf32>
    %96 = math.exp %95 : vector<16x16xf32>
    %cst_37 = arith.constant dense<0.000000e+00> : vector<16xf32>
    %97 = vector.multi_reduction <add>, %96, %cst_37 [1] : vector<16x16xf32> to vector<16xf32>
    %98 = vector.shape_cast %97 : vector<16xf32> to vector<16x1xf32>
    %99 = tpu.reciprocal %98 {approx = true} : vector<16x1xf32> -> vector<16x1xf32>
    %100 = vector.broadcast %99 : vector<16x1xf32> to vector<16x16xf32>
    %101 = arith.mulf %96, %100 : vector<16x16xf32>
    %102 = arith.truncf %101 : vector<16x16xf32> to vector<16x16xbf16>
    %103 = vector.extract_strided_slice %63 {offsets = [0, 16], sizes = [16, 8], strides = [1, 1]} : vector<16x32xbf16> to vector<16x8xbf16>
    %cst_38 = arith.constant dense<0.000000e+00> : vector<16x8xf32>
    %104 = tpu.matmul %102, %103, %cst_38 {dimension_numbers = #tpu.dot_dimension_numbers<[1], [0], [0], [1], [0, 0, 1, 1], [], []>} : vector<16x16xbf16>, vector<16x8xbf16>, vector<16x8xf32> -> vector<16x8xf32>
    %c0_39 = arith.constant 0 : index
    %c16 = arith.constant 16 : index
    %105 = vector.load %arg5[%c0_39, %c16] : memref<16x32xf32, #tpu.memory_space<vmem>>, vector<16x8xf32>
    tpu.vector_store %arg5[%c0_39, %c16], %104 {strides = array<i32>} : memref<16x32xf32, #tpu.memory_space<vmem>>, vector<16x8xf32>,
    %106 = vector.extract_strided_slice %61 {offsets = [0, 24], sizes = [16, 8], strides = [1, 1]} : vector<16x32xbf16> to vector<16x8xbf16>
    %107 = vector.extract_strided_slice %62 {offsets = [0, 24], sizes = [16, 8], strides = [1, 1]} : vector<16x32xbf16> to vector<16x8xbf16>
    %cst_40 = arith.constant dense<0.000000e+00> : vector<16x16xf32>
    %108 = tpu.matmul %106, %107, %cst_40 {dimension_numbers = #tpu.dot_dimension_numbers<[1], [1], [0], [0], [0, 0, 1, 0], [], []>} : vector<16x8xbf16>, vector<16x8xbf16>, vector<16x16xf32> -> vector<16x16xf32>
    %109 = arith.addf %108, %15 : vector<16x16xf32>
    %110 = math.exp %109 : vector<16x16xf32>
    %cst_41 = arith.constant dense<0.000000e+00> : vector<16xf32>
    %111 = vector.multi_reduction <add>, %110, %cst_41 [1] : vector<16x16xf32> to vector<16xf32>
    %112 = vector.shape_cast %111 : vector<16xf32> to vector<16x1xf32>
    %113 = tpu.reciprocal %112 {approx = true} : vector<16x1xf32> -> vector<16x1xf32>
    %114 = vector.broadcast %113 : vector<16x1xf32> to vector<16x16xf32>
    %115 = arith.mulf %110, %114 : vector<16x16xf32>
    %116 = arith.truncf %115 : vector<16x16xf32> to vector<16x16xbf16>
    %117 = vector.extract_strided_slice %63 {offsets = [0, 24], sizes = [16, 8], strides = [1, 1]} : vector<16x32xbf16> to vector<16x8xbf16>
    %cst_42 = arith.constant dense<0.000000e+00> : vector<16x8xf32>
    %118 = tpu.matmul %116, %117, %cst_42 {dimension_numbers = #tpu.dot_dimension_numbers<[1], [0], [0], [1], [0, 0, 1, 1], [], []>} : vector<16x16xbf16>, vector<16x8xbf16>, vector<16x8xf32> -> vector<16x8xf32>
    %c0_43 = arith.constant 0 : index
    %c24 = arith.constant 24 : index
    %119 = vector.load %arg5[%c0_43, %c24] : memref<16x32xf32, #tpu.memory_space<vmem>>, vector<16x8xf32>
    tpu.vector_store %arg5[%c0_43, %c24], %118 {strides = array<i32>} : memref<16x32xf32, #tpu.memory_space<vmem>>, vector<16x8xf32>,
    %c0_44 = arith.constant 0 : index
    %c0_45 = arith.constant 0 : index
    %120 = vector.load %arg5[%c0_44, %c0_45] : memref<16x32xf32, #tpu.memory_space<vmem>>, vector<16x32xf32>
    %121 = arith.truncf %120 : vector<16x32xf32> to vector<16x32xbf16>
    %c0_46 = arith.constant 0 : index
    %c96 = arith.constant 96 : index
    %c0_47 = arith.constant 0 : index
    %122 = vector.load %arg2[%c0_46, %c96, %c0_47] : memref<2x288x128xbf16, #tpu.memory_space<vmem>>, vector<1x32x32xbf16>
    %123 = vector.shape_cast %122 : vector<1x32x32xbf16> to vector<32x32xbf16>
    %cst_48 = arith.constant dense<0.000000e+00> : vector<16x32xf32>
    %124 = tpu.matmul %121, %123, %cst_48 {dimension_numbers = #tpu.dot_dimension_numbers<[1], [0], [0], [1], [0, 0, 1, 1], [], []>} : vector<16x32xbf16>, vector<32x32xbf16>, vector<16x32xf32> -> vector<16x32xf32>
    %125 = arith.addf %5, %124 : vector<16x32xf32>
    %c13 = arith.constant 13 : index
    %c0_49 = arith.constant 0 : index
    %126 = vector.load %arg1[%c13, %c0_49] : memref<80x128xf32, #tpu.memory_space<vmem>>, vector<1x32xf32>
    %127 = vector.broadcast %126 : vector<1x32xf32> to vector<16x32xf32>
    %128 = arith.addf %125, %127 : vector<16x32xf32>
    %c14 = arith.constant 14 : index
    %c0_50 = arith.constant 0 : index
    %129 = vector.load %arg1[%c14, %c0_50] : memref<80x128xf32, #tpu.memory_space<vmem>>, vector<1x32xf32>
    %c15 = arith.constant 15 : index
    %c0_51 = arith.constant 0 : index
    %130 = vector.load %arg1[%c15, %c0_51] : memref<80x128xf32, #tpu.memory_space<vmem>>, vector<1x32xf32>
    %cst_52 = arith.constant dense<0.000000e+00> : vector<16xf32>
    %131 = vector.multi_reduction <add>, %128, %cst_52 [1] : vector<16x32xf32> to vector<16xf32>
    %132 = vector.shape_cast %131 : vector<16xf32> to vector<16x1xf32>
    %cst_53 = arith.constant 3.200000e+01 : f32
    %133 = vector.broadcast %cst_53 : f32 to vector<16x1xf32>
    %134 = arith.divf %132, %133 : vector<16x1xf32>
    %135 = vector.broadcast %134 : vector<16x1xf32> to vector<16x32xf32>
    %136 = arith.subf %128, %135 : vector<16x32xf32>
    %137 = arith.mulf %136, %136 : vector<16x32xf32>
    %cst_54 = arith.constant dense<0.000000e+00> : vector<16xf32>
    %138 = vector.multi_reduction <add>, %137, %cst_54 [1] : vector<16x32xf32> to vector<16xf32>
    %139 = vector.shape_cast %138 : vector<16xf32> to vector<16x1xf32>
    %cst_55 = arith.constant 3.200000e+01 : f32
    %140 = vector.broadcast %cst_55 : f32 to vector<16x1xf32>
    %141 = arith.divf %139, %140 : vector<16x1xf32>
    %142 = vector.broadcast %134 : vector<16x1xf32> to vector<16x32xf32>
    %143 = arith.subf %128, %142 : vector<16x32xf32>
    %cst_56 = arith.constant 9.99999974E-6 : f32
    %144 = vector.broadcast %cst_56 : f32 to vector<16x1xf32>
    %145 = arith.addf %141, %144 : vector<16x1xf32>
    %146 = math.rsqrt %145 : vector<16x1xf32>
    %147 = vector.broadcast %146 : vector<16x1xf32> to vector<16x32xf32>
    %148 = arith.mulf %143, %147 : vector<16x32xf32>
    %149 = vector.broadcast %129 : vector<1x32xf32> to vector<16x32xf32>
    %150 = arith.mulf %148, %149 : vector<16x32xf32>
    %151 = vector.broadcast %130 : vector<1x32xf32> to vector<16x32xf32>
    %152 = arith.addf %150, %151 : vector<16x32xf32>
    %153 = arith.truncf %152 : vector<16x32xf32> to vector<16x32xbf16>
    %c0_57 = arith.constant 0 : index
    %c128 = arith.constant 128 : index
    %c0_58 = arith.constant 0 : index
    %154 = vector.load %arg2[%c0_57, %c128, %c0_58] : memref<2x288x128xbf16, #tpu.memory_space<vmem>>, vector<1x32x128xbf16>
    %155 = vector.shape_cast %154 : vector<1x32x128xbf16> to vector<32x128xbf16>
    %cst_59 = arith.constant dense<0.000000e+00> : vector<16x128xf32>
    %156 = tpu.matmul %153, %155, %cst_59 {dimension_numbers = #tpu.dot_dimension_numbers<[1], [0], [0], [1], [0, 0, 1, 1], [], []>} : vector<16x32xbf16>, vector<32x128xbf16>, vector<16x128xf32> -> vector<16x128xf32>
    %c16_60 = arith.constant 16 : index
    %c0_61 = arith.constant 0 : index
    %157 = vector.load %arg1[%c16_60, %c0_61] : memref<80x128xf32, #tpu.memory_space<vmem>>, vector<1x128xf32>
    %158 = vector.broadcast %157 : vector<1x128xf32> to vector<16x128xf32>
    %159 = arith.addf %156, %158 : vector<16x128xf32>
    %cst_62 = arith.constant 1.702000e+00 : f32
    %160 = vector.broadcast %cst_62 : f32 to vector<16x128xf32>
    %161 = arith.mulf %160, %159 : vector<16x128xf32>
    %162 = arith.negf %161 : vector<16x128xf32>
    %163 = math.exp %162 : vector<16x128xf32>
    %cst_63 = arith.constant 1.000000e+00 : f32
    %164 = vector.broadcast %cst_63 : f32 to vector<16x128xf32>
    %165 = arith.addf %164, %163 : vector<16x128xf32>
    %166 = arith.divf %164, %165 : vector<16x128xf32>
    %167 = arith.mulf %159, %166 : vector<16x128xf32>
    %168 = arith.truncf %167 : vector<16x128xf32> to vector<16x128xbf16>
    %c0_64 = arith.constant 0 : index
    %c160 = arith.constant 160 : index
    %c0_65 = arith.constant 0 : index
    %169 = vector.load %arg2[%c0_64, %c160, %c0_65] : memref<2x288x128xbf16, #tpu.memory_space<vmem>>, vector<1x128x32xbf16>
    %170 = vector.shape_cast %169 : vector<1x128x32xbf16> to vector<128x32xbf16>
    %cst_66 = arith.constant dense<0.000000e+00> : vector<16x32xf32>
    %171 = tpu.matmul %168, %170, %cst_66 {dimension_numbers = #tpu.dot_dimension_numbers<[1], [0], [0], [1], [0, 0, 1, 1], [], []>} : vector<16x128xbf16>, vector<128x32xbf16>, vector<16x32xf32> -> vector<16x32xf32>
    %172 = arith.addf %128, %171 : vector<16x32xf32>
    %c17 = arith.constant 17 : index
    %c0_67 = arith.constant 0 : index
    %173 = vector.load %arg1[%c17, %c0_67] : memref<80x128xf32, #tpu.memory_space<vmem>>, vector<1x32xf32>
    %174 = vector.broadcast %173 : vector<1x32xf32> to vector<16x32xf32>
    %175 = arith.addf %172, %174 : vector<16x32xf32>
    %c24_68 = arith.constant 24 : index
    %c0_69 = arith.constant 0 : index
    %176 = vector.load %arg1[%c24_68, %c0_69] : memref<80x128xf32, #tpu.memory_space<vmem>>, vector<1x32xf32>
    %c25 = arith.constant 25 : index
    %c0_70 = arith.constant 0 : index
    %177 = vector.load %arg1[%c25, %c0_70] : memref<80x128xf32, #tpu.memory_space<vmem>>, vector<1x32xf32>
    %cst_71 = arith.constant dense<0.000000e+00> : vector<16xf32>
    %178 = vector.multi_reduction <add>, %175, %cst_71 [1] : vector<16x32xf32> to vector<16xf32>
    %179 = vector.shape_cast %178 : vector<16xf32> to vector<16x1xf32>
    %cst_72 = arith.constant 3.200000e+01 : f32
    %180 = vector.broadcast %cst_72 : f32 to vector<16x1xf32>
    %181 = arith.divf %179, %180 : vector<16x1xf32>
    %182 = vector.broadcast %181 : vector<16x1xf32> to vector<16x32xf32>
    %183 = arith.subf %175, %182 : vector<16x32xf32>
    %184 = arith.mulf %183, %183 : vector<16x32xf32>
    %cst_73 = arith.constant dense<0.000000e+00> : vector<16xf32>
    %185 = vector.multi_reduction <add>, %184, %cst_73 [1] : vector<16x32xf32> to vector<16xf32>
    %186 = vector.shape_cast %185 : vector<16xf32> to vector<16x1xf32>
    %cst_74 = arith.constant 3.200000e+01 : f32
    %187 = vector.broadcast %cst_74 : f32 to vector<16x1xf32>
    %188 = arith.divf %186, %187 : vector<16x1xf32>
    %189 = vector.broadcast %181 : vector<16x1xf32> to vector<16x32xf32>
    %190 = arith.subf %175, %189 : vector<16x32xf32>
    %cst_75 = arith.constant 9.99999974E-6 : f32
    %191 = vector.broadcast %cst_75 : f32 to vector<16x1xf32>
    %192 = arith.addf %188, %191 : vector<16x1xf32>
    %193 = math.rsqrt %192 : vector<16x1xf32>
    %194 = vector.broadcast %193 : vector<16x1xf32> to vector<16x32xf32>
    %195 = arith.mulf %190, %194 : vector<16x32xf32>
    %196 = vector.broadcast %176 : vector<1x32xf32> to vector<16x32xf32>
    %197 = arith.mulf %195, %196 : vector<16x32xf32>
    %198 = vector.broadcast %177 : vector<1x32xf32> to vector<16x32xf32>
    %199 = arith.addf %197, %198 : vector<16x32xf32>
    %200 = arith.truncf %199 : vector<16x32xf32> to vector<16x32xbf16>
    %c1 = arith.constant 1 : index
    %c0_76 = arith.constant 0 : index
    %c0_77 = arith.constant 0 : index
    %201 = vector.load %arg2[%c1, %c0_76, %c0_77] : memref<2x288x128xbf16, #tpu.memory_space<vmem>>, vector<1x32x32xbf16>
    %202 = vector.shape_cast %201 : vector<1x32x32xbf16> to vector<32x32xbf16>
    %cst_78 = arith.constant dense<0.000000e+00> : vector<16x32xf32>
    %203 = tpu.matmul %200, %202, %cst_78 {dimension_numbers = #tpu.dot_dimension_numbers<[1], [0], [0], [1], [0, 0, 1, 1], [], []>} : vector<16x32xbf16>, vector<32x32xbf16>, vector<16x32xf32> -> vector<16x32xf32>
    %c26 = arith.constant 26 : index
    %c0_79 = arith.constant 0 : index
    %204 = vector.load %arg1[%c26, %c0_79] : memref<80x128xf32, #tpu.memory_space<vmem>>, vector<1x32xf32>
    %205 = vector.broadcast %204 : vector<1x32xf32> to vector<16x32xf32>
    %206 = arith.addf %203, %205 : vector<16x32xf32>
    %c1_80 = arith.constant 1 : index
    %c32_81 = arith.constant 32 : index
    %c0_82 = arith.constant 0 : index
    %207 = vector.load %arg2[%c1_80, %c32_81, %c0_82] : memref<2x288x128xbf16, #tpu.memory_space<vmem>>, vector<1x32x32xbf16>
    %208 = vector.shape_cast %207 : vector<1x32x32xbf16> to vector<32x32xbf16>
    %cst_83 = arith.constant dense<0.000000e+00> : vector<16x32xf32>
    %209 = tpu.matmul %200, %208, %cst_83 {dimension_numbers = #tpu.dot_dimension_numbers<[1], [0], [0], [1], [0, 0, 1, 1], [], []>} : vector<16x32xbf16>, vector<32x32xbf16>, vector<16x32xf32> -> vector<16x32xf32>
    %c27 = arith.constant 27 : index
    %c0_84 = arith.constant 0 : index
    %210 = vector.load %arg1[%c27, %c0_84] : memref<80x128xf32, #tpu.memory_space<vmem>>, vector<1x32xf32>
    %211 = vector.broadcast %210 : vector<1x32xf32> to vector<16x32xf32>
    %212 = arith.addf %209, %211 : vector<16x32xf32>
    %c1_85 = arith.constant 1 : index
    %c64_86 = arith.constant 64 : index
    %c0_87 = arith.constant 0 : index
    %213 = vector.load %arg2[%c1_85, %c64_86, %c0_87] : memref<2x288x128xbf16, #tpu.memory_space<vmem>>, vector<1x32x32xbf16>
    %214 = vector.shape_cast %213 : vector<1x32x32xbf16> to vector<32x32xbf16>
    %cst_88 = arith.constant dense<0.000000e+00> : vector<16x32xf32>
    %215 = tpu.matmul %200, %214, %cst_88 {dimension_numbers = #tpu.dot_dimension_numbers<[1], [0], [0], [1], [0, 0, 1, 1], [], []>} : vector<16x32xbf16>, vector<32x32xbf16>, vector<16x32xf32> -> vector<16x32xf32>
    %c28 = arith.constant 28 : index
    %c0_89 = arith.constant 0 : index
    %216 = vector.load %arg1[%c28, %c0_89] : memref<80x128xf32, #tpu.memory_space<vmem>>, vector<1x32xf32>
    %217 = vector.broadcast %216 : vector<1x32xf32> to vector<16x32xf32>
    %218 = arith.addf %215, %217 : vector<16x32xf32>
    %cst_90 = arith.constant 0.353553385 : f32
    %219 = vector.broadcast %cst_90 : f32 to vector<16x32xf32>
    %220 = arith.mulf %206, %219 : vector<16x32xf32>
    %221 = arith.truncf %220 : vector<16x32xf32> to vector<16x32xbf16>
    %222 = arith.truncf %212 : vector<16x32xf32> to vector<16x32xbf16>
    %223 = arith.truncf %218 : vector<16x32xf32> to vector<16x32xbf16>
    %224 = vector.extract_strided_slice %221 {offsets = [0, 0], sizes = [16, 8], strides = [1, 1]} : vector<16x32xbf16> to vector<16x8xbf16>
    %225 = vector.extract_strided_slice %222 {offsets = [0, 0], sizes = [16, 8], strides = [1, 1]} : vector<16x32xbf16> to vector<16x8xbf16>
    %cst_91 = arith.constant dense<0.000000e+00> : vector<16x16xf32>
    %226 = tpu.matmul %224, %225, %cst_91 {dimension_numbers = #tpu.dot_dimension_numbers<[1], [1], [0], [0], [0, 0, 1, 0], [], []>} : vector<16x8xbf16>, vector<16x8xbf16>, vector<16x16xf32> -> vector<16x16xf32>
    %227 = arith.addf %226, %15 : vector<16x16xf32>
    %228 = math.exp %227 : vector<16x16xf32>
    %cst_92 = arith.constant dense<0.000000e+00> : vector<16xf32>
    %229 = vector.multi_reduction <add>, %228, %cst_92 [1] : vector<16x16xf32> to vector<16xf32>
    %230 = vector.shape_cast %229 : vector<16xf32> to vector<16x1xf32>
    %231 = tpu.reciprocal %230 {approx = true} : vector<16x1xf32> -> vector<16x1xf32>
    %232 = vector.broadcast %231 : vector<16x1xf32> to vector<16x16xf32>
    %233 = arith.mulf %228, %232 : vector<16x16xf32>
    %234 = arith.truncf %233 : vector<16x16xf32> to vector<16x16xbf16>
    %235 = vector.extract_strided_slice %223 {offsets = [0, 0], sizes = [16, 8], strides = [1, 1]} : vector<16x32xbf16> to vector<16x8xbf16>
    %cst_93 = arith.constant dense<0.000000e+00> : vector<16x8xf32>
    %236 = tpu.matmul %234, %235, %cst_93 {dimension_numbers = #tpu.dot_dimension_numbers<[1], [0], [0], [1], [0, 0, 1, 1], [], []>} : vector<16x16xbf16>, vector<16x8xbf16>, vector<16x8xf32> -> vector<16x8xf32>
    %c0_94 = arith.constant 0 : index
    %c0_95 = arith.constant 0 : index
    %237 = vector.load %arg5[%c0_94, %c0_95] : memref<16x32xf32, #tpu.memory_space<vmem>>, vector<16x8xf32>
    tpu.vector_store %arg5[%c0_94, %c0_95], %236 {strides = array<i32>} : memref<16x32xf32, #tpu.memory_space<vmem>>, vector<16x8xf32>,
    %238 = vector.extract_strided_slice %221 {offsets = [0, 8], sizes = [16, 8], strides = [1, 1]} : vector<16x32xbf16> to vector<16x8xbf16>
    %239 = vector.extract_strided_slice %222 {offsets = [0, 8], sizes = [16, 8], strides = [1, 1]} : vector<16x32xbf16> to vector<16x8xbf16>
    %cst_96 = arith.constant dense<0.000000e+00> : vector<16x16xf32>
    %240 = tpu.matmul %238, %239, %cst_96 {dimension_numbers = #tpu.dot_dimension_numbers<[1], [1], [0], [0], [0, 0, 1, 0], [], []>} : vector<16x8xbf16>, vector<16x8xbf16>, vector<16x16xf32> -> vector<16x16xf32>
    %241 = arith.addf %240, %15 : vector<16x16xf32>
    %242 = math.exp %241 : vector<16x16xf32>
    %cst_97 = arith.constant dense<0.000000e+00> : vector<16xf32>
    %243 = vector.multi_reduction <add>, %242, %cst_97 [1] : vector<16x16xf32> to vector<16xf32>
    %244 = vector.shape_cast %243 : vector<16xf32> to vector<16x1xf32>
    %245 = tpu.reciprocal %244 {approx = true} : vector<16x1xf32> -> vector<16x1xf32>
    %246 = vector.broadcast %245 : vector<16x1xf32> to vector<16x16xf32>
    %247 = arith.mulf %242, %246 : vector<16x16xf32>
    %248 = arith.truncf %247 : vector<16x16xf32> to vector<16x16xbf16>
    %249 = vector.extract_strided_slice %223 {offsets = [0, 8], sizes = [16, 8], strides = [1, 1]} : vector<16x32xbf16> to vector<16x8xbf16>
    %cst_98 = arith.constant dense<0.000000e+00> : vector<16x8xf32>
    %250 = tpu.matmul %248, %249, %cst_98 {dimension_numbers = #tpu.dot_dimension_numbers<[1], [0], [0], [1], [0, 0, 1, 1], [], []>} : vector<16x16xbf16>, vector<16x8xbf16>, vector<16x8xf32> -> vector<16x8xf32>
    %c0_99 = arith.constant 0 : index
    %c8_100 = arith.constant 8 : index
    %251 = vector.load %arg5[%c0_99, %c8_100] : memref<16x32xf32, #tpu.memory_space<vmem>>, vector<16x8xf32>
    tpu.vector_store %arg5[%c0_99, %c8_100], %250 {strides = array<i32>} : memref<16x32xf32, #tpu.memory_space<vmem>>, vector<16x8xf32>,
    %252 = vector.extract_strided_slice %221 {offsets = [0, 16], sizes = [16, 8], strides = [1, 1]} : vector<16x32xbf16> to vector<16x8xbf16>
    %253 = vector.extract_strided_slice %222 {offsets = [0, 16], sizes = [16, 8], strides = [1, 1]} : vector<16x32xbf16> to vector<16x8xbf16>
    %cst_101 = arith.constant dense<0.000000e+00> : vector<16x16xf32>
    %254 = tpu.matmul %252, %253, %cst_101 {dimension_numbers = #tpu.dot_dimension_numbers<[1], [1], [0], [0], [0, 0, 1, 0], [], []>} : vector<16x8xbf16>, vector<16x8xbf16>, vector<16x16xf32> -> vector<16x16xf32>
    %255 = arith.addf %254, %15 : vector<16x16xf32>
    %256 = math.exp %255 : vector<16x16xf32>
    %cst_102 = arith.constant dense<0.000000e+00> : vector<16xf32>
    %257 = vector.multi_reduction <add>, %256, %cst_102 [1] : vector<16x16xf32> to vector<16xf32>
    %258 = vector.shape_cast %257 : vector<16xf32> to vector<16x1xf32>
    %259 = tpu.reciprocal %258 {approx = true} : vector<16x1xf32> -> vector<16x1xf32>
    %260 = vector.broadcast %259 : vector<16x1xf32> to vector<16x16xf32>
    %261 = arith.mulf %256, %260 : vector<16x16xf32>
    %262 = arith.truncf %261 : vector<16x16xf32> to vector<16x16xbf16>
    %263 = vector.extract_strided_slice %223 {offsets = [0, 16], sizes = [16, 8], strides = [1, 1]} : vector<16x32xbf16> to vector<16x8xbf16>
    %cst_103 = arith.constant dense<0.000000e+00> : vector<16x8xf32>
    %264 = tpu.matmul %262, %263, %cst_103 {dimension_numbers = #tpu.dot_dimension_numbers<[1], [0], [0], [1], [0, 0, 1, 1], [], []>} : vector<16x16xbf16>, vector<16x8xbf16>, vector<16x8xf32> -> vector<16x8xf32>
    %c0_104 = arith.constant 0 : index
    %c16_105 = arith.constant 16 : index
    %265 = vector.load %arg5[%c0_104, %c16_105] : memref<16x32xf32, #tpu.memory_space<vmem>>, vector<16x8xf32>
    tpu.vector_store %arg5[%c0_104, %c16_105], %264 {strides = array<i32>} : memref<16x32xf32, #tpu.memory_space<vmem>>, vector<16x8xf32>,
    %266 = vector.extract_strided_slice %221 {offsets = [0, 24], sizes = [16, 8], strides = [1, 1]} : vector<16x32xbf16> to vector<16x8xbf16>
    %267 = vector.extract_strided_slice %222 {offsets = [0, 24], sizes = [16, 8], strides = [1, 1]} : vector<16x32xbf16> to vector<16x8xbf16>
    %cst_106 = arith.constant dense<0.000000e+00> : vector<16x16xf32>
    %268 = tpu.matmul %266, %267, %cst_106 {dimension_numbers = #tpu.dot_dimension_numbers<[1], [1], [0], [0], [0, 0, 1, 0], [], []>} : vector<16x8xbf16>, vector<16x8xbf16>, vector<16x16xf32> -> vector<16x16xf32>
    %269 = arith.addf %268, %15 : vector<16x16xf32>
    %270 = math.exp %269 : vector<16x16xf32>
    %cst_107 = arith.constant dense<0.000000e+00> : vector<16xf32>
    %271 = vector.multi_reduction <add>, %270, %cst_107 [1] : vector<16x16xf32> to vector<16xf32>
    %272 = vector.shape_cast %271 : vector<16xf32> to vector<16x1xf32>
    %273 = tpu.reciprocal %272 {approx = true} : vector<16x1xf32> -> vector<16x1xf32>
    %274 = vector.broadcast %273 : vector<16x1xf32> to vector<16x16xf32>
    %275 = arith.mulf %270, %274 : vector<16x16xf32>
    %276 = arith.truncf %275 : vector<16x16xf32> to vector<16x16xbf16>
    %277 = vector.extract_strided_slice %223 {offsets = [0, 24], sizes = [16, 8], strides = [1, 1]} : vector<16x32xbf16> to vector<16x8xbf16>
    %cst_108 = arith.constant dense<0.000000e+00> : vector<16x8xf32>
    %278 = tpu.matmul %276, %277, %cst_108 {dimension_numbers = #tpu.dot_dimension_numbers<[1], [0], [0], [1], [0, 0, 1, 1], [], []>} : vector<16x16xbf16>, vector<16x8xbf16>, vector<16x8xf32> -> vector<16x8xf32>
    %c0_109 = arith.constant 0 : index
    %c24_110 = arith.constant 24 : index
    %279 = vector.load %arg5[%c0_109, %c24_110] : memref<16x32xf32, #tpu.memory_space<vmem>>, vector<16x8xf32>
    tpu.vector_store %arg5[%c0_109, %c24_110], %278 {strides = array<i32>} : memref<16x32xf32, #tpu.memory_space<vmem>>, vector<16x8xf32>,
    %c0_111 = arith.constant 0 : index
    %c0_112 = arith.constant 0 : index
    %280 = vector.load %arg5[%c0_111, %c0_112] : memref<16x32xf32, #tpu.memory_space<vmem>>, vector<16x32xf32>
    %281 = arith.truncf %280 : vector<16x32xf32> to vector<16x32xbf16>
    %c1_113 = arith.constant 1 : index
    %c96_114 = arith.constant 96 : index
    %c0_115 = arith.constant 0 : index
    %282 = vector.load %arg2[%c1_113, %c96_114, %c0_115] : memref<2x288x128xbf16, #tpu.memory_space<vmem>>, vector<1x32x32xbf16>
    %283 = vector.shape_cast %282 : vector<1x32x32xbf16> to vector<32x32xbf16>
    %cst_116 = arith.constant dense<0.000000e+00> : vector<16x32xf32>
    %284 = tpu.matmul %281, %283, %cst_116 {dimension_numbers = #tpu.dot_dimension_numbers<[1], [0], [0], [1], [0, 0, 1, 1], [], []>} : vector<16x32xbf16>, vector<32x32xbf16>, vector<16x32xf32> -> vector<16x32xf32>
    %285 = arith.addf %175, %284 : vector<16x32xf32>
    %c29 = arith.constant 29 : index
    %c0_117 = arith.constant 0 : index
    %286 = vector.load %arg1[%c29, %c0_117] : memref<80x128xf32, #tpu.memory_space<vmem>>, vector<1x32xf32>
    %287 = vector.broadcast %286 : vector<1x32xf32> to vector<16x32xf32>
    %288 = arith.addf %285, %287 : vector<16x32xf32>
    %c30 = arith.constant 30 : index
    %c0_118 = arith.constant 0 : index
    %289 = vector.load %arg1[%c30, %c0_118] : memref<80x128xf32, #tpu.memory_space<vmem>>, vector<1x32xf32>
    %c31 = arith.constant 31 : index
    %c0_119 = arith.constant 0 : index
    %290 = vector.load %arg1[%c31, %c0_119] : memref<80x128xf32, #tpu.memory_space<vmem>>, vector<1x32xf32>
    %cst_120 = arith.constant dense<0.000000e+00> : vector<16xf32>
    %291 = vector.multi_reduction <add>, %288, %cst_120 [1] : vector<16x32xf32> to vector<16xf32>
    %292 = vector.shape_cast %291 : vector<16xf32> to vector<16x1xf32>
    %cst_121 = arith.constant 3.200000e+01 : f32
    %293 = vector.broadcast %cst_121 : f32 to vector<16x1xf32>
    %294 = arith.divf %292, %293 : vector<16x1xf32>
    %295 = vector.broadcast %294 : vector<16x1xf32> to vector<16x32xf32>
    %296 = arith.subf %288, %295 : vector<16x32xf32>
    %297 = arith.mulf %296, %296 : vector<16x32xf32>
    %cst_122 = arith.constant dense<0.000000e+00> : vector<16xf32>
    %298 = vector.multi_reduction <add>, %297, %cst_122 [1] : vector<16x32xf32> to vector<16xf32>
    %299 = vector.shape_cast %298 : vector<16xf32> to vector<16x1xf32>
    %cst_123 = arith.constant 3.200000e+01 : f32
    %300 = vector.broadcast %cst_123 : f32 to vector<16x1xf32>
    %301 = arith.divf %299, %300 : vector<16x1xf32>
    %302 = vector.broadcast %294 : vector<16x1xf32> to vector<16x32xf32>
    %303 = arith.subf %288, %302 : vector<16x32xf32>
    %cst_124 = arith.constant 9.99999974E-6 : f32
    %304 = vector.broadcast %cst_124 : f32 to vector<16x1xf32>
    %305 = arith.addf %301, %304 : vector<16x1xf32>
    %306 = math.rsqrt %305 : vector<16x1xf32>
    %307 = vector.broadcast %306 : vector<16x1xf32> to vector<16x32xf32>
    %308 = arith.mulf %303, %307 : vector<16x32xf32>
    %309 = vector.broadcast %289 : vector<1x32xf32> to vector<16x32xf32>
    %310 = arith.mulf %308, %309 : vector<16x32xf32>
    %311 = vector.broadcast %290 : vector<1x32xf32> to vector<16x32xf32>
    %312 = arith.addf %310, %311 : vector<16x32xf32>
    %313 = arith.truncf %312 : vector<16x32xf32> to vector<16x32xbf16>
    %c1_125 = arith.constant 1 : index
    %c128_126 = arith.constant 128 : index
    %c0_127 = arith.constant 0 : index
    %314 = vector.load %arg2[%c1_125, %c128_126, %c0_127] : memref<2x288x128xbf16, #tpu.memory_space<vmem>>, vector<1x32x128xbf16>
    %315 = vector.shape_cast %314 : vector<1x32x128xbf16> to vector<32x128xbf16>
    %cst_128 = arith.constant dense<0.000000e+00> : vector<16x128xf32>
    %316 = tpu.matmul %313, %315, %cst_128 {dimension_numbers = #tpu.dot_dimension_numbers<[1], [0], [0], [1], [0, 0, 1, 1], [], []>} : vector<16x32xbf16>, vector<32x128xbf16>, vector<16x128xf32> -> vector<16x128xf32>
    %c32_129 = arith.constant 32 : index
    %c0_130 = arith.constant 0 : index
    %317 = vector.load %arg1[%c32_129, %c0_130] : memref<80x128xf32, #tpu.memory_space<vmem>>, vector<1x128xf32>
    %318 = vector.broadcast %317 : vector<1x128xf32> to vector<16x128xf32>
    %319 = arith.addf %316, %318 : vector<16x128xf32>
    %cst_131 = arith.constant 1.702000e+00 : f32
    %320 = vector.broadcast %cst_131 : f32 to vector<16x128xf32>
    %321 = arith.mulf %320, %319 : vector<16x128xf32>
    %322 = arith.negf %321 : vector<16x128xf32>
    %323 = math.exp %322 : vector<16x128xf32>
    %cst_132 = arith.constant 1.000000e+00 : f32
    %324 = vector.broadcast %cst_132 : f32 to vector<16x128xf32>
    %325 = arith.addf %324, %323 : vector<16x128xf32>
    %326 = arith.divf %324, %325 : vector<16x128xf32>
    %327 = arith.mulf %319, %326 : vector<16x128xf32>
    %328 = arith.truncf %327 : vector<16x128xf32> to vector<16x128xbf16>
    %c1_133 = arith.constant 1 : index
    %c160_134 = arith.constant 160 : index
    %c0_135 = arith.constant 0 : index
    %329 = vector.load %arg2[%c1_133, %c160_134, %c0_135] : memref<2x288x128xbf16, #tpu.memory_space<vmem>>, vector<1x128x32xbf16>
    %330 = vector.shape_cast %329 : vector<1x128x32xbf16> to vector<128x32xbf16>
    %cst_136 = arith.constant dense<0.000000e+00> : vector<16x32xf32>
    %331 = tpu.matmul %328, %330, %cst_136 {dimension_numbers = #tpu.dot_dimension_numbers<[1], [0], [0], [1], [0, 0, 1, 1], [], []>} : vector<16x128xbf16>, vector<128x32xbf16>, vector<16x32xf32> -> vector<16x32xf32>
    %332 = arith.addf %288, %331 : vector<16x32xf32>
    %c33 = arith.constant 33 : index
    %c0_137 = arith.constant 0 : index
    %333 = vector.load %arg1[%c33, %c0_137] : memref<80x128xf32, #tpu.memory_space<vmem>>, vector<1x32xf32>
    %334 = vector.broadcast %333 : vector<1x32xf32> to vector<16x32xf32>
    %335 = arith.addf %332, %334 : vector<16x32xf32>
    %c0_138 = arith.constant 0 : index
    %c0_139 = arith.constant 0 : index
    %336 = vector.load %arg5[%c0_138, %c0_139] : memref<16x32xf32, #tpu.memory_space<vmem>>, vector<16x32xf32>
    tpu.vector_store %arg5[%c0_138, %c0_139], %335 {strides = array<i32>} : memref<16x32xf32, #tpu.memory_space<vmem>>, vector<16x32xf32>,
    %c0_140 = arith.constant 0 : index
    %337 = memref.load %arg3[%c0_140] : memref<2xi32, #tpu.memory_space<smem>>
    %c0_i32 = arith.constant 0 : i32
    %338 = arith.addi %c0_i32, %337 : i32
    %339 = arith.index_cast %338 : i32 to index
    %c0_141 = arith.constant 0 : index
    %340 = vector.load %arg5[%339, %c0_141] : memref<16x32xf32, #tpu.memory_space<vmem>>, vector<1x32xf32>
    %c1_142 = arith.constant 1 : index
    %341 = memref.load %arg3[%c1_142] : memref<2xi32, #tpu.memory_space<smem>>
    %c8_i32 = arith.constant 8 : i32
    %342 = arith.addi %c8_i32, %341 : i32
    %343 = arith.index_cast %342 : i32 to index
    %c0_143 = arith.constant 0 : index
    %344 = vector.load %arg5[%343, %c0_143] : memref<16x32xf32, #tpu.memory_space<vmem>>, vector<1x32xf32>
    %345 = tpu.concatenate %340, %344 in 0 : vector<1x32xf32>, vector<1x32xf32> -> vector<2x32xf32>
    %c40 = arith.constant 40 : index
    %c0_144 = arith.constant 0 : index
    %346 = vector.load %arg1[%c40, %c0_144] : memref<80x128xf32, #tpu.memory_space<vmem>>, vector<1x32xf32>
    %c41 = arith.constant 41 : index
    %c0_145 = arith.constant 0 : index
    %347 = vector.load %arg1[%c41, %c0_145] : memref<80x128xf32, #tpu.memory_space<vmem>>, vector<1x32xf32>
    %cst_146 = arith.constant dense<0.000000e+00> : vector<2xf32>
    %348 = vector.multi_reduction <add>, %345, %cst_146 [1] : vector<2x32xf32> to vector<2xf32>
    %349 = vector.shape_cast %348 : vector<2xf32> to vector<2x1xf32>
    %cst_147 = arith.constant 3.200000e+01 : f32
    %350 = vector.broadcast %cst_147 : f32 to vector<2x1xf32>
    %351 = arith.divf %349, %350 : vector<2x1xf32>
    %352 = vector.broadcast %351 : vector<2x1xf32> to vector<2x32xf32>
    %353 = arith.subf %345, %352 : vector<2x32xf32>
    %354 = arith.mulf %353, %353 : vector<2x32xf32>
    %cst_148 = arith.constant dense<0.000000e+00> : vector<2xf32>
    %355 = vector.multi_reduction <add>, %354, %cst_148 [1] : vector<2x32xf32> to vector<2xf32>
    %356 = vector.shape_cast %355 : vector<2xf32> to vector<2x1xf32>
    %cst_149 = arith.constant 3.200000e+01 : f32
    %357 = vector.broadcast %cst_149 : f32 to vector<2x1xf32>
    %358 = arith.divf %356, %357 : vector<2x1xf32>
    %359 = vector.broadcast %351 : vector<2x1xf32> to vector<2x32xf32>
    %360 = arith.subf %345, %359 : vector<2x32xf32>
    %cst_150 = arith.constant 9.99999974E-6 : f32
    %361 = vector.broadcast %cst_150 : f32 to vector<2x1xf32>
    %362 = arith.addf %358, %361 : vector<2x1xf32>
    %363 = math.rsqrt %362 : vector<2x1xf32>
    %364 = vector.broadcast %363 : vector<2x1xf32> to vector<2x32xf32>
    %365 = arith.mulf %360, %364 : vector<2x32xf32>
    %366 = vector.broadcast %346 : vector<1x32xf32> to vector<2x32xf32>
    %367 = arith.mulf %365, %366 : vector<2x32xf32>
    %368 = vector.broadcast %347 : vector<1x32xf32> to vector<2x32xf32>
    %369 = arith.addf %367, %368 : vector<2x32xf32>
    %c48 = arith.constant 48 : index
    %c0_151 = arith.constant 0 : index
    %370 = vector.load %arg1[%c48, %c0_151] : memref<80x128xf32, #tpu.memory_space<vmem>>, vector<32x16xf32>
    %cst_152 = arith.constant dense<0.000000e+00> : vector<2x16xf32>
    %371 = tpu.matmul %369, %370, %cst_152 {dimension_numbers = #tpu.dot_dimension_numbers<[1], [0], [0], [1], [0, 0, 1, 1], [], []>} : vector<2x32xf32>, vector<32x16xf32>, vector<2x16xf32> -> vector<2x16xf32>
    %c0_153 = arith.constant 0 : index
    %c0_154 = arith.constant 0 : index
    %372 = vector.load %arg4[%c0_153, %c0_154] : memref<2x16xf32, #tpu.memory_space<vmem>>, vector<2x16xf32>
    tpu.vector_store %arg4[%c0_153, %c0_154], %371 {strides = array<i32>} : memref<2x16xf32, #tpu.memory_space<vmem>>, vector<2x16xf32>,
    return
  }
}

</mosaic_0001>

<bundles_post_ra>
// kernel: text_encoder_forward.1
= control target key start
LH: loop header
LB: loop body
LE: loop exit
PB: predicated region body
PF: predicated region fallthrough
CT: control target
= control target key end

     0   :  { %9 = vsyncpa [#allocation5], 0  ;;  %s3418_s0 = inlined_call_operand.vmem [shape: f32[2,8,32], index: 0, kind: input, shape index: {}]   ;;  %s3419_s1 = inlined_call_operand.vmem [shape: f32[80,128], index: 1, kind: input, shape index: {}]   ;;  %s3420_s2 = inlined_call_operand.vmem [shape: bf16[2,288,128], index: 2, kind: input, shape index: {}]   ;;  %s3421_s3 = inlined_call_operand.vmem [shape: s32[2], index: 3, kind: input, shape index: {}]   ;;  %s3422_s4 = inlined_call_operand.hbm [shape: f32[2,16], index: 4, kind: output, shape index: {}]  }
   0x1   :  { %10 = vsyncpa [#allocation4], 0  ;;  %s23_s17 = sshll.u32 %s3421_s3, 4  ;;  %s24_s17 = int_to_ptr.vmem [resolvable:$true] %s23_s17 }
   0x2   :  { %s2836_s18 = scalar_lea.vmem %s24_s17, 16  ;;  %p2841_p1 = scmp.lt.s32.totalorder %s24_s17, %s24_s17 }
   0x3   :  { %p2837_p0 = scmp.ne.s32.totalorder %s24_s17, %s2836_s18  ;;  %p2842_p2 = scmp.lt.s32.totalorder %s2836_s18, %s2836_s18 }
   0x5   :  { %p2843_p3 = por %p2842_p2, %p2841_p1 }
   0x7   :  { %p2844_p4 = pnand %p2843_p3, %p2837_p0 }
   0x9   :  { %2847 = shalt.err (!%p2844_p4)
}
   0xa   :  { %s2874_s19 = smov [#allocation3]  }
   0xb   :  { %26 = dma.vmem_to_smem %s24_s17, 16, %s2874_s19, [#allocation5]  }
   0xc   :  { %2870 = dma.done.wait [#allocation5], 16  }
   0xd   :  { %2871 = vsyncadd [#allocation5], 4294967280 }
   0xe   :  { %30 = sfence }
   0xf   :  { %v32_v0 = vld [vmem:[%s3419_s1] sm:$0xff]  ;;  %vm54_vm0 = vcmask 261120   ;;  %v34_v2 = vld [vmem:[%s3418_s0 + $0x8] sm:$0xff]  ;;  %v2875_v18 = vmov 0.0   ;;  %vm2876_vm1 = vmmov 0   ;;  %v2704_v36 = vld [vmem:[%s3420_s2 + $0x10] sm:$0xff]  }
  0x10   :  { %v33_v1 = vld [vmem:[%s3418_s0] sm:$0xff]  ;;  %v2925_v4 = vadd.f32 %v34_v2, %v32_v0  ;;  %2457 = vmatprep.subr.bf16.mxu1 %v2875_v18  ;;  %2487 = vmatprep.subr.bf16.mxu0 %v2875_v18  ;;  %v2703_v19 = vld [vmem:[%s3420_s2 + $0x8] sm:$0xff]   ;;  %v2705_v38 = vld [vmem:[%s3420_s2 + $0x18] sm:$0xff]   ;;  %s2877_s18 = smov 120   ;;  %vm289_vm2 = vcmask 64512   ;;  %s2878_s19 = smov 112  }
  0x11   :  { %v2923_v3 = vadd.f32 %v33_v1, %v32_v0  ;;  %v2702_v17 = vld [vmem:[%s3420_s2] sm:$0xff]   ;;  %2461 = vmatprep.mubr.msk.bf16.mxu1 %vm2876_vm1, %v2875_v18  ;;  %2489 = vmatprep.mubr.msk.bf16.mxu0 %vm2876_vm1, %v2875_v18  ;;  %v2245_v28 = vld [vmem:[%s3419_s1 + $0x8] ss:$0 sm:$0xff]  ;;  %v2246_v32 = vld [vmem:[%s3419_s1 + $0x9] ss:$0 sm:$0xff]  ;;  %s2879_s22 = smov 104  }
  0x12   :  { %v58_v6 = vsel %vm54_vm0, %v2925_v4, 0.0  ;;  %2458 = vmatpush3.bf16.msra.mxu1 %v2702_v17  ;;  %v2706_v39 = vld [vmem:[%s3420_s2 + $0x20] sm:$0xff]   ;;  %v2707_v40 = vld [vmem:[%s3420_s2 + $0x28] sm:$0xff]   ;;  %vm341_vm7 = vcmask 130048   ;;  %s2881_s23 = smov 8   ;;  %s2882_s3 = smov 16  }
  0x13   :  { %v55_v5 = vsel %vm54_vm0, %v2923_v3, 0.0  ;;  %2459 = vmatprep.subr.bf16.mxu1 %v2875_v18  ;;  %v2247_v41 = vld [vmem:[%s3419_s1 + $0xa] ss:$0 sm:$0xff]  ;;  %v2251_v51 = vld [vmem:[%s3419_s1 + $0xb] ss:$0 sm:$0xff]  ;;  %s2883_s27 = smov 24  }
  0x14   :  { %56 = vadd.xlane.f32.xlu0 %v55_v5  ;;  %v2255_v60 = vld [vmem:[%s3419_s1 + $0xc] ss:$0 sm:$0xff]  ;;  %vm523_vm8 = vcmask 130112   ;;  %vm647_vm9 = vcmask 195712   ;;  %vm771_vm10 = vcmask 261312   ;;  %vm2120_vm11 = vcmask 1040384  }
  0x15   :  { %vm2124_vm12 = vcmask 254976   ;;  %s2885_s29 = smov [#allocation6]   ;;  %vm2225_vm13 = vcmask 123904  }
  0x16   :  { %2460 = vmatpush3.bf16.msra.mxu1 %v2703_v19  ;;  %s2233_s30 = sshll.u32 %s2885_s29, 4  ;;  %s2234_s30 = int_to_ptr.vmem [resolvable:$true] %s2233_s30 }
  0x17   :  { %2465 = vmatprep.subr.bf16.mxu1 %v2875_v18  ;;  %s2848_s5 = scalar_lea.vmem %s2234_s30, 32  ;;  %p2853_p6 = scmp.lt.s32.totalorder %s2234_s30, %s2234_s30 }
  0x18   :  { %59 = vadd.xlane.f32.xlu0 %v58_v6  ;;  %p2849_p5 = scmp.ne.s32.totalorder %s2234_s30, %s2848_s5  ;;  %p2854_p7 = scmp.lt.s32.totalorder %s2848_s5, %s2848_s5 }
  0x1a   :  { %p2855_p8 = por %p2854_p7, %p2853_p6 }
  0x1c   :  { %p2856_p9 = pnand %p2855_p8, %p2849_p5 }
  0xa1   :  { %v57_v7 = vpop.xlane.xlu0 %56 }
  0xa2   :  { %v62_v8 = vmul.f32 0.03125, %v57_v7 }
  0xa4   :  { %v64_v9 = vsub.f32 %v2923_v3, %v62_v8 }
  0xa5   :  { %v60_v10 = vpop.xlane.xlu0 %59 }
  0xa6   :  { %v63_v11 = vmul.f32 0.03125, %v60_v10  ;;  %v66_v12 = vmul.f32 %v64_v9, %v64_v9 }
  0xa8   :  { %v65_v13 = vsub.f32 %v2925_v4, %v63_v11  ;;  %v68_v14 = vsel %vm54_vm0, %v66_v12, 0.0 }
  0xa9   :  { %69 = vadd.xlane.f32.xlu1 %v68_v14 }
  0xaa   :  { %v67_v15 = vmul.f32 %v65_v13, %v65_v13 }
  0xac   :  { %v71_v16 = vsel %vm54_vm0, %v67_v15, 0.0  ;;  %v37_v15 = vlaneseq }
  0xad   :  { %72 = vadd.xlane.f32.xlu1 %v71_v16 }
  0xae   :  { %v38_v16 = vshrl.u32 %v37_v15, 7  ;;  %v41_v19 = vand.u32 127, %v37_v15 }
  0xb0   :  { %v39_v17 = vadd.s32 8, %v38_v16  ;;  %vm44_vm5 = vcmp.le.s32.totalorder %v41_v19, %v38_v16 }
  0xb2   :  { %vm45_vm3 = vcmp.le.s32.totalorder %v41_v19, %v39_v17 }
 0x136   :  { %v70_v20 = vpop.xlane.xlu1 %69 }
 0x137   :  { %v74_v21 = vmul.f32 0.03125, %v70_v20  ;;  %v43_v20 = vand.u32 4294967288, %v39_v17 }
 0x139   :  { %v76_v22 = vadd.f32 1e-05, %v74_v21  ;;  %vm47_vm4 = vcmp.ge.s32.totalorder %v41_v19, %v43_v20  ;;  %v2880_v21 = vmov -1e+09  }
 0x13a   :  { %v73_v23 = vpop.xlane.xlu1 %72  ;;  %vm49_vm6 = vmand %vm45_vm3, %vm47_vm4 }
 0x13b   :  { %2738 = vrsqrt.f32 %v76_v22  ;;  %v75_v24 = vmul.f32 0.03125, %v73_v23  ;;  %v3019_v22 = vsel %vm44_vm5, 0.0, %v2880_v21 }
 0x13d   :  { %v77_v25 = vadd.f32 1e-05, %v75_v24  ;;  %v3021_v24 = vsel %vm49_vm6, 0.0, %v2880_v21 }
 0x13f   :  { %2740 = vrsqrt.f32 %v77_v25 }
 0x145   :  { %v2739_v26 = vpop.eup %2738 }
 0x146   :  { %v80_v27 = vmul.f32 %v2739_v26, %v64_v9 }
 0x148   :  { %v86_v31 = vmul.f32 %v2245_v28, %v80_v27 }
 0x149   :  { %v2741_v29 = vpop.eup %2740 }
 0x14a   :  { %v81_v30 = vmul.f32 %v2741_v29, %v65_v13  ;;  %v92_v34 = vadd.f32 %v2246_v32, %v86_v31 }
 0x14c   :  { %v87_v33 = vmul.f32 %v2245_v28, %v81_v30 }
 0x14e   :  { %v93_v35 = vadd.f32 %v2246_v32, %v87_v33 }
 0x150   :  { %v94_v37 = vpack.c.bf16 %v93_v35, %v92_v34 }
 0x152   :  { %2462 = vmatmul.mubr.msk.bf16.vlgmr.msra.gmra.mrb[0].mxu1 %vm54_vm0, %v94_v37 }
 0x153   :  { %2466 = vmatpush3.bf16.msra.mxu1 %v2704_v36  ;;  %2469 = vmatprep.mubr.msk.bf16.mxu1 %vm2876_vm1, %v2875_v18 }
 0x154   :  { %2467 = vmatprep.subr.bf16.mxu1 %v2875_v18 }
 0x157   :  { %2468 = vmatpush3.bf16.msra.mxu1 %v2705_v38 }
 0x158   :  { %2473 = vmatprep.subr.bf16.mxu1 %v2875_v18 }
 0x15a   :  { %2470 = vmatmul.mubr.msk.bf16.vlgmr.msra.gmra.mrb[4].mxu1 %vm54_vm0, %v94_v37 }
 0x15b   :  { %2474 = vmatpush3.bf16.msra.mxu1 %v2706_v39  ;;  %2477 = vmatprep.mubr.msk.bf16.mxu1 %vm2876_vm1, %v2875_v18 }
 0x15c   :  { %2475 = vmatprep.subr.bf16.mxu1 %v2875_v18 }
 0x15f   :  { %2476 = vmatpush3.bf16.msra.mxu1 %v2707_v40 }
 0x160   :  { %2481 = vmatprep.subr.bf16.mxu1 %v2875_v18 }
 0x162   :  { %2478 = vmatmul.mubr.msk.bf16.vlgmr.msra.gmra.mrb[8].mxu1 %vm54_vm0, %v94_v37 }
 0x163   :  { %2483 = vmatprep.mubr.msk.bf16.mxu1 %vm2876_vm1, %v2875_v18 }
 0x225   :  { %v153_v42 = vpop.f32.mrb[0].mxu1 }
 0x226   :  { %v154_v43 = vadd.f32 %v2247_v41, %v153_v42  ;;  %v2463_v44 = vpop.f32.mrb[1].mxu1 }
 0x227   :  { %v156_v45 = vpop.f32.mrb[2].mxu1 }
 0x228   :  { %v157_v46 = vadd.f32 %v2247_v41, %v156_v45  ;;  %v2464_v47 = vpop.f32.mrb[3].mxu1  ;;  %v284_v48 = vmul.f32 0.35355338, %v154_v43 }
 0x22a   :  { %v285_v49 = vmul.f32 0.35355338, %v157_v46 }
 0x22c   :  { %v286_v50 = vpack.c.bf16 %v285_v49, %v284_v48 }
 0x22d   :  { %v215_v52 = vpop.f32.mrb[4].mxu1 }
 0x22e   :  { %400 = vrot.lane.b32.xlu1 %v286_v50, %s2877_s18  ;;  %v2471_v53 = vpop.f32.mrb[5].mxu1  ;;  %v216_v55 = vadd.f32 %v2251_v51, %v215_v52 }
 0x22f   :  { %v218_v54 = vpop.f32.mrb[6].mxu1 }
 0x230   :  { %v219_v56 = vadd.f32 %v2251_v51, %v218_v54  ;;  %v2472_v57 = vpop.f32.mrb[7].mxu1 }
 0x232   :  { %v287_v58 = vpack.c.bf16 %v219_v56, %v216_v55 }
 0x234   :  { %528 = vrot.lane.b32.xlu1 %v287_v58, %s2878_s19  ;;  %403 = vrot.lane.b32.xlu0 %v287_v58, %s2877_s18  ;;  %v294_v59 = vsel %vm289_vm2, %v287_v58, 0 }
 0x235   :  { %v277_v61 = vpop.f32.mrb[8].mxu1  ;;  %2482 = vmatpush3.bf16.xpose.msra.mxu1 %v294_v59 }
 0x236   :  { %v2479_v62 = vpop.f32.mrb[9].mxu1  ;;  %2493 = vmatprep.subr.bf16.mxu1 %v2875_v18  ;;  %v278_v0 = vadd.f32 %v2255_v60, %v277_v61 }
 0x237   :  { %v280_v63 = vpop.f32.mrb[10].mxu1 }
 0x238   :  { %v281_v1 = vadd.f32 %v2255_v60, %v280_v63  ;;  %526 = vrot.lane.b32.xlu1 %v286_v50, %s2878_s19  ;;  %652 = vrot.lane.b32.xlu0 %v287_v58, %s2879_s22  ;;  %v2480_v2 = vpop.f32.mrb[11].mxu1 }
 0x23a   :  { %v2996_v5 = vpack.c.bf16 %v281_v1, %v278_v0 }
 0x23c   :  { %650 = vrot.lane.b32.xlu1 %v286_v50, %s2879_s22  ;;  %2484 = vmatmul.mubr.msk.bf16.vlgmr.msra.gmra.mrb[12].mxu1 %vm289_vm2, %v286_v50 }
 0x23d   :  { %2488 = vmatpush3.bf16.msra.mxu0 %v2996_v5  ;;  %2495 = vmatprep.mubr.msk.bf16.mxu1 %vm2876_vm1, %v2875_v18 }
 0x23e   :  { %2499 = vmatprep.subr.bf16.mxu0 %v2875_v18 }
 0x2a0   :  { %v401_v8 = vpop.permute.xlu1 %400 }
 0x2a6   :  { %v404_v6 = vpop.permute.xlu0 %403  ;;  %v529_v9 = vpop.permute.xlu1 %528 }
 0x2a7   :  { %v409_v7 = vsel %vm289_vm2, %v404_v6, 0  ;;  %v534_v10 = vsel %vm289_vm2, %v529_v9, 0 }
 0x2a8   :  { %2494 = vmatpush3.bf16.xpose.msra.mxu1 %v409_v7 }
 0x2a9   :  { %2505 = vmatprep.subr.bf16.mxu1 %v2875_v18 }
 0x2aa   :  { %v653_v11 = vpop.permute.xlu0 %652  ;;  %v527_v12 = vpop.permute.xlu1 %526 }
 0x2ab   :  { %v658_v13 = vsel %vm289_vm2, %v653_v11, 0 }
 0x2ae   :  { %v651_v14 = vpop.permute.xlu1 %650 }
 0x2af   :  { %2496 = vmatmul.mubr.msk.bf16.vlgmr.msra.gmra.mrb[16].mxu1 %vm289_vm2, %v401_v8 }
 0x2b0   :  { %2506 = vmatpush3.bf16.xpose.msra.mxu1 %v534_v10  ;;  %2507 = vmatprep.mubr.msk.bf16.mxu1 %vm2876_vm1, %v2875_v18 }
 0x2b1   :  { %2517 = vmatprep.subr.bf16.mxu1 %v2875_v18 }
 0x2b7   :  { %2508 = vmatmul.mubr.msk.bf16.vlgmr.msra.gmra.mrb[20].mxu1 %vm289_vm2, %v527_v12 }
 0x2b8   :  { %2518 = vmatpush3.bf16.xpose.msra.mxu1 %v658_v13  ;;  %2519 = vmatprep.mubr.msk.bf16.mxu1 %vm2876_vm1, %v2875_v18 }
 0x2b9   :  { %2529 = vmatprep.subr.bf16.mxu1 %v2875_v18 }
 0x2bf   :  { %2520 = vmatmul.mubr.msk.bf16.vlgmr.msra.gmra.mrb[24].mxu1 %vm289_vm2, %v651_v14 }
 0x2c0   :  { %2533 = vmatprep.mubr.msk.bf16.mxu1 %vm2876_vm1, %v2875_v18 }
 0x30f   :  { %v330_v23 = vpop.f32.mrb[12].mxu1 }
 0x310   :  { %v331_v25 = vadd.f32 %v330_v23, %v3019_v22  ;;  %v2485_v26 = vpop.f32.mrb[13].mxu1 }
 0x311   :  { %v333_v27 = vpop.f32.mrb[14].mxu1 }
 0x312   :  { %v337_v28 = vmul.f32 1.442695, %v331_v25  ;;  %v334_v29 = vadd.f32 %v333_v27, %v3021_v24  ;;  %v2486_v30 = vpop.f32.mrb[15].mxu1 }
 0x314   :  { %2742 = vpow2.f32 %v337_v28  ;;  %v339_v31 = vmul.f32 1.442695, %v334_v29 }
 0x316   :  { %2744 = vpow2.f32 %v339_v31 }
 0x31e   :  { %v2743_v32 = vpop.eup %2742 }
 0x31f   :  { %v342_v33 = vsel %vm341_vm7, %v2743_v32, 0.0 }
 0x320   :  { %v2745_v34 = vpop.eup %2744  ;;  %343 = vadd.xlane.f32.xlu0 %v342_v33 }
 0x321   :  { %v345_v35 = vsel %vm341_vm7, %v2745_v34, 0.0 }
 0x322   :  { %346 = vadd.xlane.f32.xlu1 %v345_v35 }
 0x382   :  { %v445_v36 = vpop.f32.mrb[16].mxu1 }
 0x383   :  { %v446_v37 = vadd.f32 %v445_v36, %v3019_v22  ;;  %v2497_v38 = vpop.f32.mrb[17].mxu1 }
 0x384   :  { %v448_v39 = vpop.f32.mrb[18].mxu1 }
 0x385   :  { %v452_v40 = vmul.f32 1.442695, %v446_v37  ;;  %v449_v41 = vadd.f32 %v448_v39, %v3021_v24  ;;  %v2498_v42 = vpop.f32.mrb[19].mxu1 }
 0x387   :  { %2746 = vpow2.f32 %v452_v40  ;;  %v454_v43 = vmul.f32 1.442695, %v449_v41 }
 0x389   :  { %2748 = vpow2.f32 %v454_v43 }
 0x38a   :  { %v570_v44 = vpop.f32.mrb[20].mxu1 }
 0x38b   :  { %v571_v45 = vadd.f32 %v570_v44, %v3019_v22  ;;  %v2509_v46 = vpop.f32.mrb[21].mxu1 }
 0x38c   :  { %v573_v47 = vpop.f32.mrb[22].mxu1 }
 0x38d   :  { %v577_v48 = vmul.f32 1.442695, %v571_v45  ;;  %v574_v49 = vadd.f32 %v573_v47, %v3021_v24  ;;  %v2510_v50 = vpop.f32.mrb[23].mxu1 }
 0x38f   :  { %2750 = vpow2.f32 %v577_v48  ;;  %v579_v51 = vmul.f32 1.442695, %v574_v49 }
 0x391   :  { %v2747_v52 = vpop.eup %2746  ;;  %2752 = vpow2.f32 %v579_v51 }
 0x392   :  { %v694_v53 = vpop.f32.mrb[24].mxu1  ;;  %v456_v54 = vsel %vm341_vm7, %v2747_v52, 0.0 }
 0x393   :  { %v2749_v55 = vpop.eup %2748  ;;  %v695_v56 = vadd.f32 %v694_v53, %v3019_v22  ;;  %457 = vadd.xlane.f32.xlu0 %v456_v54  ;;  %v2521_v57 = vpop.f32.mrb[25].mxu1 }
 0x394   :  { %v697_v58 = vpop.f32.mrb[26].mxu1  ;;  %v459_v61 = vsel %vm341_vm7, %v2749_v55, 0.0  ;;  %v2709_v57 = vld [vmem:[%s3420_s2 + $0x38] sm:$0xff]  }
 0x395   :  { %v701_v59 = vmul.f32 1.442695, %v695_v56  ;;  %v2522_v60 = vpop.f32.mrb[27].mxu1  ;;  %v698_v13 = vadd.f32 %v697_v58, %v3021_v24  ;;  %v2708_v56 = vld [vmem:[%s3420_s2 + $0x30] sm:$0xff]  }
 0x396   :  { %2530 = vmatpush3.bf16.msra.mxu1 %v2708_v56  ;;  %v2718_v56 = vld [vmem:[%s3420_s2 + $0x80] sm:$0xff]  }
 0x397   :  { %2754 = vpow2.f32 %v701_v59  ;;  %460 = vadd.xlane.f32.xlu0 %v459_v61  ;;  %v703_v15 = vmul.f32 1.442695, %v698_v13  ;;  %2531 = vmatprep.subr.bf16.mxu1 %v2875_v18 }
 0x399   :  { %v2751_v62 = vpop.eup %2750 }
 0x39a   :  { %v581_v63 = vsel %vm341_vm7, %v2751_v62, 0.0  ;;  %2532 = vmatpush3.bf16.msra.mxu1 %v2709_v57  ;;  %v2719_v57 = vld [vmem:[%s3420_s2 + $0x88] sm:$0xff]  }
 0x39b   :  { %v2753_v0 = vpop.eup %2752  ;;  %582 = vadd.xlane.f32.xlu0 %v581_v63  ;;  %2545 = vmatprep.subr.bf16.mxu1 %v2875_v18 }
 0x39c   :  { %v584_v1 = vsel %vm341_vm7, %v2753_v0, 0.0 }
 0x39d   :  { %585 = vadd.xlane.f32.xlu1 %v584_v1 }
 0x3a1   :  { %v2755_v2 = vpop.eup %2754 }
 0x3a2   :  { %v705_v6 = vsel %vm341_vm7, %v2755_v2, 0.0 }
 0x3a3   :  { %706 = vadd.xlane.f32.xlu0 %v705_v6 }
 0x3ad   :  { %v344_v7 = vpop.xlane.xlu0 %343 }
 0x3ae   :  { %2756 = vrcp.f32 %v344_v7  ;;  %592 = vrot.lane.b32.xlu1 %v2996_v5, %s2878_s19 }
 0x3af   :  { %v347_v8 = vpop.xlane.xlu1 %346 }
 0x3b0   :  { %2758 = vrcp.f32 %v347_v8 }
 0x3b1   :  { %2760 = vpow2.f32 %v703_v15 }
 0x3b8   :  { %v2757_v9 = vpop.eup %2756 }
 0x3b9   :  { %468 = vrot.lane.b32.xlu0 %v2996_v5, %s2877_s18  ;;  %v350_v11 = vmul.f32 %v2757_v9, %v2743_v32 }
 0x3ba   :  { %v2759_v10 = vpop.eup %2758 }
 0x3bb   :  { %v351_v12 = vmul.f32 %v2759_v10, %v2745_v34  ;;  %v2761_v16 = vpop.eup %2760 }
 0x3bc   :  { %v708_v17 = vsel %vm341_vm7, %v2761_v16, 0.0 }
 0x3bd   :  { %v352_v14 = vpack.c.bf16 %v351_v12, %v350_v11  ;;  %v2270_v11 = vld [vmem:[%s3419_s1 + $0xd] ss:$0 sm:$0xff] }
 0x3bf   :  { %2490 = vmatmul.mubr.msk.bf16.vlgmr.msra.gmra.mrb[0].mxu0 %vm341_vm7, %v352_v14 }
 0x3c0   :  { %2501 = vmatprep.mubr.msk.bf16.mxu0 %vm2876_vm1, %v2875_v18 }
 0x3d2   :  { %709 = vadd.xlane.f32.xlu1 %v708_v17 }
 0x3e3   :  { %716 = vrot.lane.b32.xlu1 %v2996_v5, %s2879_s22 }
 0x420   :  { %v458_v19 = vpop.xlane.xlu0 %457 }
 0x424   :  { %v461_v20 = vpop.xlane.xlu0 %460 }
 0x425   :  { %2762 = vrcp.f32 %v461_v20 }
 0x426   :  { %2764 = vrcp.f32 %v458_v19 }
 0x428   :  { %v583_v23 = vpop.xlane.xlu0 %582 }
 0x42a   :  { %v586_v21 = vpop.xlane.xlu1 %585 }
 0x42b   :  { %2766 = vrcp.f32 %v586_v21 }
 0x42c   :  { %2768 = vrcp.f32 %v583_v23 }
 0x42e   :  { %v593_v5 = vpop.permute.xlu1 %592 }
 0x42f   :  { %v2763_v25 = vpop.eup %2762 }
 0x430   :  { %v707_v26 = vpop.xlane.xlu0 %706  ;;  %v2765_v27 = vpop.eup %2764  ;;  %v465_v28 = vmul.f32 %v2763_v25, %v2749_v55 }
 0x431   :  { %v464_v29 = vmul.f32 %v2765_v27, %v2747_v52  ;;  %2770 = vrcp.f32 %v707_v26 }
 0x433   :  { %v466_v31 = vpack.c.bf16 %v465_v28, %v464_v29 }
 0x434   :  { %v469_v30 = vpop.permute.xlu0 %468 }
 0x435   :  { %2500 = vmatpush3.bf16.msra.mxu0 %v469_v30  ;;  %v2767_v32 = vpop.eup %2766 }
 0x436   :  { %2511 = vmatprep.subr.bf16.mxu0 %v2875_v18  ;;  %v2769_v33 = vpop.eup %2768  ;;  %v590_v34 = vmul.f32 %v2767_v32, %v2753_v0  ;;  %v2710_v32 = vld [vmem:[%s3420_s2 + $0x40] sm:$0xff]  }
 0x437   :  { %v589_v35 = vmul.f32 %v2769_v33, %v2751_v62 }
 0x438   :  { %2502 = vmatmul.mubr.msk.bf16.vlgmr.msra.gmra.mrb[4].mxu0 %vm341_vm7, %v466_v31 }
 0x439   :  { %2512 = vmatpush3.bf16.msra.mxu0 %v593_v5  ;;  %2513 = vmatprep.mubr.msk.bf16.mxu0 %vm2876_vm1, %v2875_v18  ;;  %v591_v36 = vpack.c.bf16 %v590_v34, %v589_v35  ;;  %v2711_v5 = vld [vmem:[%s3420_s2 + $0x48] sm:$0xff]  }
 0x43a   :  { %2523 = vmatprep.subr.bf16.mxu0 %v2875_v18 }
 0x43b   :  { %v2771_v39 = vpop.eup %2770 }
 0x43c   :  { %v713_v41 = vmul.f32 %v2771_v39, %v2755_v2 }
 0x440   :  { %2514 = vmatmul.mubr.msk.bf16.vlgmr.msra.gmra.mrb[8].mxu0 %vm341_vm7, %v591_v36 }
 0x441   :  { %2525 = vmatprep.mubr.msk.bf16.mxu0 %vm2876_vm1, %v2875_v18 }
 0x45f   :  { %v710_v37 = vpop.xlane.xlu1 %709 }
 0x460   :  { %2772 = vrcp.f32 %v710_v37 }
 0x463   :  { %v717_v38 = vpop.permute.xlu1 %716 }
 0x464   :  { %2524 = vmatpush3.bf16.msra.mxu0 %v717_v38 }
 0x465   :  { %2537 = vmatprep.subr.bf16.mxu0 %v2875_v18 }
 0x46a   :  { %v2773_v40 = vpop.eup %2772 }
 0x46b   :  { %v714_v42 = vmul.f32 %v2773_v40, %v2761_v16 }
 0x46d   :  { %v715_v43 = vpack.c.bf16 %v714_v42, %v713_v41  ;;  %v2271_v41 = vld [vmem:[%s3419_s1 + $0xe] ss:$0 sm:$0xff] }
 0x46f   :  { %2526 = vmatmul.mubr.msk.bf16.vlgmr.msra.gmra.mrb[12].mxu0 %vm341_vm7, %v715_v43 }
 0x470   :  { %2541 = vmatprep.mubr.msk.bf16.mxu0 %vm2876_vm1, %v2875_v18  ;;  %2538 = vmatpush3.bf16.msra.mxu0 %v2710_v32 }
 0x471   :  { %2539 = vmatprep.subr.bf16.mxu0 %v2875_v18 }
 0x474   :  { %2540 = vmatpush3.bf16.msra.mxu0 %v2711_v5 }
 0x475   :  { %2565 = vmatprep.subr.bf16.mxu0 %v2875_v18 }
 0x492   :  { %v390_v44 = vpop.f32.mrb[0].mxu0 }
 0x493   :  { %397 = vst.msk [vmem:[#allocation2] sm:$0xff] %vm289_vm2, %v390_v44  ;;  %v2491_v45 = vpop.f32.mrb[1].mxu0 }
 0x494   :  { %v393_v46 = vpop.f32.mrb[2].mxu0  ;;  %v2272_v45 = vld [vmem:[%s3419_s1 + $0xf] ss:$0 sm:$0xff] }
 0x495   :  { %398 = vst.msk [vmem:[#allocation2 + $0x8] sm:$0xff] %vm289_vm2, %v393_v46  ;;  %v2492_v47 = vpop.f32.mrb[3].mxu0 }
 0x50b   :  { %v508_v48 = vpop.f32.mrb[4].mxu0 }
 0x50c   :  { %v2503_v49 = vpop.f32.mrb[5].mxu0  ;;  %517 = vrot.lane.b32.xlu1 %v508_v48, %s2881_s23 }
 0x50d   :  { %v511_v50 = vpop.f32.mrb[6].mxu0 }
 0x50e   :  { %519 = vrot.lane.b32.xlu0 %v511_v50, %s2881_s23  ;;  %v2504_v51 = vpop.f32.mrb[7].mxu0  ;;  %v2712_v50 = vld [vmem:[%s3420_s2 + $0x50] sm:$0xff]  }
 0x50f   :  { %v2713_v51 = vld [vmem:[%s3420_s2 + $0x58] sm:$0xff]  }
 0x513   :  { %v632_v52 = vpop.f32.mrb[8].mxu0 }
 0x514   :  { %v2515_v53 = vpop.f32.mrb[9].mxu0  ;;  %641 = vrot.lane.b32.xlu1 %v632_v52, %s2882_s3  ;;  %v2714_v52 = vld [vmem:[%s3420_s2 + $0x60] sm:$0xff]  }
 0x515   :  { %v635_v54 = vpop.f32.mrb[10].mxu0  ;;  %v2715_v53 = vld [vmem:[%s3420_s2 + $0x68] sm:$0xff]  }
 0x516   :  { %643 = vrot.lane.b32.xlu0 %v635_v54, %s2882_s3  ;;  %v2516_v55 = vpop.f32.mrb[11].mxu0  ;;  %v2716_v54 = vld [vmem:[%s3420_s2 + $0x70] sm:$0xff]  }
 0x517   :  { %v2717_v55 = vld [vmem:[%s3420_s2 + $0x78] sm:$0xff]  }
 0x542   :  { %v756_v58 = vpop.f32.mrb[12].mxu0 }
 0x543   :  { %765 = vrot.lane.b32.xlu1 %v756_v58, %s2883_s27  ;;  %v2527_v59 = vpop.f32.mrb[13].mxu0  ;;  %v2273_v58 = vld [vmem:[%s3419_s1 + $0x10] ss:$0 sm:$0xff] }
 0x544   :  { %v759_v60 = vpop.f32.mrb[14].mxu0 }
 0x545   :  { %767 = vrot.lane.b32.xlu0 %v759_v60, %s2883_s27  ;;  %v2528_v61 = vpop.f32.mrb[15].mxu0 }
 0x57e   :  { %v518_v62 = vpop.permute.xlu1 %517 }
 0x57f   :  { %524 = vst.msk [vmem:[#allocation2] sm:$0xff] %vm523_vm8, %v518_v62 }
 0x580   :  { %v520_v63 = vpop.permute.xlu0 %519 }
 0x581   :  { %525 = vst.msk [vmem:[#allocation2 + $0x8] sm:$0xff] %vm523_vm8, %v520_v63 }
 0x586   :  { %v642_v0 = vpop.permute.xlu1 %641 }
 0x587   :  { %648 = vst.msk [vmem:[#allocation2] sm:$0xff] %vm647_vm9, %v642_v0 }
 0x588   :  { %v644_v1 = vpop.permute.xlu0 %643 }
 0x589   :  { %649 = vst.msk [vmem:[#allocation2 + $0x8] sm:$0xff] %vm647_vm9, %v644_v1 }
 0x5b5   :  { %v766_v2 = vpop.permute.xlu1 %765 }
 0x5b6   :  { %772 = vst.msk [vmem:[#allocation2] sm:$0xff] %vm771_vm10, %v766_v2 }
 0x5b7   :  { %v768_v6 = vpop.permute.xlu0 %767 }
 0x5b8   :  { %773 = vst.msk [vmem:[#allocation2 + $0x8] sm:$0xff] %vm771_vm10, %v768_v6 }
 0x5bd   :  { %v774_v7 = vld [vmem:[#allocation2] sm:$0xff] }
 0x5bf   :  { %v775_v8 = vld [vmem:[#allocation2 + $0x8] sm:$0xff] }
 0x5c0   :  { %v776_v9 = vpack.c.bf16 %v775_v8, %v774_v7 }
 0x5c2   :  { %2534 = vmatmul.mubr.msk.bf16.vlgmr.msra.gmra.mrb[28].mxu1 %vm54_vm0, %v776_v9 }
 0x5c3   :  { %2561 = vmatprep.mubr.msk.bf16.mxu1 %vm2876_vm1, %v2875_v18  ;;  %2546 = vmatpush3.bf16.msra.mxu1 %v2712_v50 }
 0x5c4   :  { %2547 = vmatprep.subr.bf16.mxu1 %v2875_v18 }
 0x5c7   :  { %2548 = vmatpush3.bf16.msra.mxu1 %v2713_v51 }
 0x5c8   :  { %2549 = vmatprep.subr.bf16.mxu1 %v2875_v18 }
 0x5cb   :  { %2550 = vmatpush3.bf16.msra.mxu1 %v2714_v52  ;;  %v2289_v52 = vld [vmem:[%s3419_s1 + $0x19] ss:$0 sm:$0xff] }
 0x5cc   :  { %2551 = vmatprep.subr.bf16.mxu1 %v2875_v18 }
 0x5cf   :  { %2552 = vmatpush3.bf16.msra.mxu1 %v2715_v53 }
 0x5d0   :  { %2553 = vmatprep.subr.bf16.mxu1 %v2875_v18 }
 0x5d3   :  { %2554 = vmatpush3.bf16.msra.mxu1 %v2716_v54 }
 0x5d4   :  { %2555 = vmatprep.subr.bf16.mxu1 %v2875_v18 }
 0x5d7   :  { %2556 = vmatpush3.bf16.msra.mxu1 %v2717_v55 }
 0x5d8   :  { %2557 = vmatprep.subr.bf16.mxu1 %v2875_v18 }
 0x5db   :  { %2558 = vmatpush3.bf16.msra.mxu1 %v2718_v56  ;;  %v2722_v56 = vld [vmem:[%s3420_s2 + $0xa0] sm:$0xff]  }
 0x5dc   :  { %2559 = vmatprep.subr.bf16.mxu1 %v2875_v18 }
 0x5df   :  { %2560 = vmatpush3.bf16.msra.mxu1 %v2719_v57 }
 0x5e0   :  { %2595 = vmatprep.subr.bf16.mxu1 %v2875_v18 }
 0x695   :  { %v830_v10 = vpop.f32.mrb[28].mxu1 }
 0x696   :  { %v837_v12 = vadd.f32 %v830_v10, %v2923_v3  ;;  %v2535_v13 = vpop.f32.mrb[29].mxu1 }
 0x697   :  { %v833_v14 = vpop.f32.mrb[30].mxu1 }
 0x698   :  { %v3089_v15 = vadd.f32 %v2270_v11, %v837_v12  ;;  %v838_v16 = vadd.f32 %v833_v14, %v2925_v4  ;;  %v2536_v17 = vpop.f32.mrb[31].mxu1 }
 0x69a   :  { %v3092_v19 = vadd.f32 %v2270_v11, %v838_v16  ;;  %v848_v20 = vsel %vm54_vm0, %v3089_v15, 0.0 }
 0x69b   :  { %849 = vadd.xlane.f32.xlu1 %v848_v20 }
 0x69c   :  { %v851_v21 = vsel %vm54_vm0, %v3092_v19, 0.0 }
 0x69d   :  { %852 = vadd.xlane.f32.xlu0 %v851_v21  ;;  %v2287_v21 = vld [vmem:[%s3419_s1 + $0x11] ss:$0 sm:$0xff] }
 0x728   :  { %v850_v23 = vpop.xlane.xlu1 %849 }
 0x729   :  { %v854_v25 = vmul.f32 0.03125, %v850_v23 }
 0x72a   :  { %v853_v3 = vpop.xlane.xlu0 %852 }
 0x72b   :  { %v856_v26 = vsub.f32 %v3089_v15, %v854_v25  ;;  %v855_v27 = vmul.f32 0.03125, %v853_v3 }
 0x72d   :  { %v857_v28 = vsub.f32 %v3092_v19, %v855_v27  ;;  %v858_v4 = vmul.f32 %v856_v26, %v856_v26 }
 0x72f   :  { %v860_v29 = vsel %vm54_vm0, %v858_v4, 0.0  ;;  %v859_v30 = vmul.f32 %v857_v28, %v857_v28 }
 0x730   :  { %861 = vadd.xlane.f32.xlu0 %v860_v29 }
 0x731   :  { %v863_v31 = vsel %vm54_vm0, %v859_v30, 0.0 }
 0x734   :  { %864 = vadd.xlane.f32.xlu0 %v863_v31 }
 0x7bd   :  { %v862_v33 = vpop.xlane.xlu0 %861 }
 0x7be   :  { %v866_v34 = vmul.f32 0.03125, %v862_v33 }
 0x7c0   :  { %v868_v35 = vadd.f32 1e-05, %v866_v34 }
 0x7c1   :  { %v865_v36 = vpop.xlane.xlu0 %864 }
 0x7c2   :  { %2774 = vrsqrt.f32 %v868_v35  ;;  %v867_v37 = vmul.f32 0.03125, %v865_v36 }
 0x7c4   :  { %v869_v38 = vadd.f32 1e-05, %v867_v37 }
 0x7c6   :  { %2776 = vrsqrt.f32 %v869_v38  ;;  %v2720_v38 = vld [vmem:[%s3420_s2 + $0x90] sm:$0xff]  }
 0x7cc   :  { %v2775_v39 = vpop.eup %2774 }
 0x7cd   :  { %v872_v40 = vmul.f32 %v2775_v39, %v856_v26  ;;  %v2721_v39 = vld [vmem:[%s3420_s2 + $0x98] sm:$0xff]  }
 0x7cf   :  { %v878_v43 = vmul.f32 %v2271_v41, %v872_v40 }
 0x7d0   :  { %v2777_v42 = vpop.eup %2776 }
 0x7d1   :  { %v873_v44 = vmul.f32 %v2777_v42, %v857_v28  ;;  %v884_v47 = vadd.f32 %v2272_v45, %v878_v43 }
 0x7d3   :  { %v879_v46 = vmul.f32 %v2271_v41, %v873_v44 }
 0x7d5   :  { %v885_v48 = vadd.f32 %v2272_v45, %v879_v46 }
 0x7d7   :  { %v886_v49 = vpack.c.bf16 %v885_v48, %v884_v47  ;;  %v2288_v47 = vld [vmem:[%s3419_s1 + $0x18] ss:$0 sm:$0xff] }
 0x7d9   :  { %2542 = vmatmul.mubr.msk.bf16.vlgmr.msra.gmra.mrb[16].mxu0 %vm54_vm0, %v886_v49 }
 0x7da   :  { %2569 = vmatprep.mubr.msk.bf16.mxu0 %vm2876_vm1, %v2875_v18  ;;  %2566 = vmatpush3.bf16.msra.mxu0 %v2720_v38 }
 0x7db   :  { %2567 = vmatprep.subr.bf16.mxu0 %v2875_v18 }
 0x7de   :  { %2568 = vmatpush3.bf16.msra.mxu0 %v2721_v39 }
 0x7df   :  { %2573 = vmatprep.subr.bf16.mxu0 %v2875_v18 }
 0x8ac   :  { %v945_v59 = vpop.f32.mrb[16].mxu0 }
 0x8ad   :  { %v946_v60 = vadd.f32 %v2273_v58, %v945_v59  ;;  %v2543_v61 = vpop.f32.mrb[17].mxu0  ;;  %v2724_v59 = vld [vmem:[%s3420_s2 + $0xb0] sm:$0xff]  }
 0x8ae   :  { %v948_v62 = vpop.f32.mrb[18].mxu0  ;;  %v2294_v61 = vld [vmem:[%s3419_s1 + $0x1a] ss:$0 sm:$0xff] }
 0x8af   :  { %v2277_v63 = vmul.f32 -1.702, %v946_v60  ;;  %v949_v0 = vadd.f32 %v2273_v58, %v948_v62  ;;  %v2544_v1 = vpop.f32.mrb[19].mxu0  ;;  %v2723_v58 = vld [vmem:[%s3420_s2 + $0xa8] sm:$0xff]  }
 0x8b1   :  { %v956_v2 = vmul.f32 1.442695, %v2277_v63  ;;  %v2278_v6 = vmul.f32 -1.702, %v949_v0 }
 0x8b3   :  { %2778 = vpow2.f32 %v956_v2  ;;  %v958_v7 = vmul.f32 1.442695, %v2278_v6 }
 0x8b5   :  { %2780 = vpow2.f32 %v958_v7 }
 0x8bd   :  { %v2779_v8 = vpop.eup %2778 }
 0x8be   :  { %v960_v9 = vadd.f32 1.0, %v2779_v8 }
 0x8bf   :  { %v2781_v10 = vpop.eup %2780 }
 0x8c0   :  { %2782 = vrcp.f32 %v960_v9  ;;  %v961_v11 = vadd.f32 1.0, %v2781_v10  ;;  %v2302_v10 = vld [vmem:[%s3419_s1 + $0x1b] ss:$0 sm:$0xff] }
 0x8c2   :  { %2784 = vrcp.f32 %v961_v11 }
 0x8ca   :  { %v2783_v12 = vpop.eup %2782 }
 0x8cb   :  { %v966_v14 = vmul.f32 %v2783_v12, %v946_v60  ;;  %v2725_v60 = vld [vmem:[%s3420_s2 + $0xb8] sm:$0xff]  }
 0x8cc   :  { %v2785_v13 = vpop.eup %2784 }
 0x8cd   :  { %v967_v16 = vmul.f32 %v2785_v13, %v949_v0 }
 0x8cf   :  { %v968_v17 = vpack.c.bf16 %v967_v16, %v966_v14 }
 0x8d1   :  { %2562 = vmatmul.mubr.bf16.vlgmr.msra.gmra.mrb[32].mxu1 %v968_v17 }
 0x8d2   :  { %2597 = vmatprep.mubr.msk.bf16.mxu1 %vm2876_vm1, %v2875_v18 }
 0x9a4   :  { %v1067_v20 = vpop.f32.mrb[32].mxu1 }
 0x9a5   :  { %v1074_v23 = vadd.f32 %v1067_v20, %v3089_v15  ;;  %v2563_v25 = vpop.f32.mrb[33].mxu1 }
 0x9a6   :  { %v1070_v3 = vpop.f32.mrb[34].mxu1 }
 0x9a7   :  { %v3160_v26 = vadd.f32 %v2287_v21, %v1074_v23  ;;  %v1075_v27 = vadd.f32 %v1070_v3, %v3092_v19  ;;  %v2564_v28 = vpop.f32.mrb[35].mxu1  ;;  %v2310_v23 = vld [vmem:[%s3419_s1 + $0x1c] ss:$0 sm:$0xff] }
 0x9a9   :  { %v3163_v4 = vadd.f32 %v2287_v21, %v1075_v27  ;;  %v1085_v29 = vsel %vm54_vm0, %v3160_v26, 0.0 }
 0x9aa   :  { %1086 = vadd.xlane.f32.xlu1 %v1085_v29 }
 0x9ab   :  { %v1088_v30 = vsel %vm54_vm0, %v3163_v4, 0.0 }
 0x9ac   :  { %1089 = vadd.xlane.f32.xlu0 %v1088_v30 }
 0xa37   :  { %v1087_v31 = vpop.xlane.xlu1 %1086 }
 0xa38   :  { %v1091_v32 = vmul.f32 0.03125, %v1087_v31 }
 0xa39   :  { %v1090_v15 = vpop.xlane.xlu0 %1089 }
 0xa3a   :  { %v1093_v5 = vsub.f32 %v3160_v26, %v1091_v32  ;;  %v1092_v33 = vmul.f32 0.03125, %v1090_v15 }
 0xa3c   :  { %v1094_v34 = vsub.f32 %v3163_v4, %v1092_v33  ;;  %v1095_v19 = vmul.f32 %v1093_v5, %v1093_v5 }
 0xa3e   :  { %v1097_v35 = vsel %vm54_vm0, %v1095_v19, 0.0  ;;  %v1096_v36 = vmul.f32 %v1094_v34, %v1094_v34 }
 0xa3f   :  { %1098 = vadd.xlane.f32.xlu1 %v1097_v35 }
 0xa40   :  { %v1100_v37 = vsel %vm54_vm0, %v1096_v36, 0.0 }
 0xa41   :  { %1101 = vadd.xlane.f32.xlu0 %v1100_v37 }
 0xacc   :  { %v1099_v40 = vpop.xlane.xlu1 %1098 }
 0xacd   :  { %v1103_v41 = vmul.f32 0.03125, %v1099_v40 }
 0xace   :  { %v1102_v42 = vpop.xlane.xlu0 %1101 }
 0xacf   :  { %v1105_v43 = vadd.f32 1e-05, %v1103_v41  ;;  %v1104_v44 = vmul.f32 0.03125, %v1102_v42 }
 0xad1   :  { %2786 = vrsqrt.f32 %v1105_v43  ;;  %v1106_v45 = vadd.f32 1e-05, %v1104_v44 }
 0xad3   :  { %2788 = vrsqrt.f32 %v1106_v45 }
 0xadb   :  { %v2787_v46 = vpop.eup %2786 }
 0xadc   :  { %v1109_v48 = vmul.f32 %v2787_v46, %v1093_v5 }
 0xadd   :  { %v2789_v49 = vpop.eup %2788 }
 0xade   :  { %v1115_v50 = vmul.f32 %v2288_v47, %v1109_v48  ;;  %v1110_v51 = vmul.f32 %v2789_v49, %v1094_v34 }
 0xae0   :  { %v1116_v53 = vmul.f32 %v2288_v47, %v1110_v51  ;;  %v1121_v54 = vadd.f32 %v2289_v52, %v1115_v50 }
 0xae2   :  { %v1122_v55 = vadd.f32 %v2289_v52, %v1116_v53 }
 0xae4   :  { %v1123_v57 = vpack.c.bf16 %v1122_v55, %v1121_v54 }
 0xae6   :  { %2570 = vmatmul.mubr.msk.bf16.vlgmr.msra.gmra.mrb[20].mxu0 %vm54_vm0, %v1123_v57 }
 0xae7   :  { %2574 = vmatpush3.bf16.msra.mxu0 %v2722_v56  ;;  %2577 = vmatprep.mubr.msk.bf16.mxu0 %vm2876_vm1, %v2875_v18 }
 0xae8   :  { %2575 = vmatprep.subr.bf16.mxu0 %v2875_v18 }
 0xaeb   :  { %2576 = vmatpush3.bf16.msra.mxu0 %v2723_v58 }
 0xaec   :  { %2581 = vmatprep.subr.bf16.mxu0 %v2875_v18 }
 0xaee   :  { %2578 = vmatmul.mubr.msk.bf16.vlgmr.msra.gmra.mrb[24].mxu0 %vm54_vm0, %v1123_v57 }
 0xaef   :  { %2582 = vmatpush3.bf16.msra.mxu0 %v2724_v59  ;;  %2585 = vmatprep.mubr.msk.bf16.mxu0 %vm2876_vm1, %v2875_v18 }
 0xaf0   :  { %2583 = vmatprep.subr.bf16.mxu0 %v2875_v18 }
 0xaf3   :  { %2584 = vmatpush3.bf16.msra.mxu0 %v2725_v60 }
 0xaf4   :  { %2589 = vmatprep.subr.bf16.mxu0 %v2875_v18 }
 0xaf6   :  { %2586 = vmatmul.mubr.msk.bf16.vlgmr.msra.gmra.mrb[28].mxu0 %vm54_vm0, %v1123_v57 }
 0xaf7   :  { %2591 = vmatprep.mubr.msk.bf16.mxu0 %vm2876_vm1, %v2875_v18 }
 0xbb9   :  { %v1183_v62 = vpop.f32.mrb[20].mxu0 }
 0xbba   :  { %v1184_v63 = vadd.f32 %v2294_v61, %v1183_v62  ;;  %v2571_v0 = vpop.f32.mrb[21].mxu0 }
 0xbbb   :  { %v1186_v1 = vpop.f32.mrb[22].mxu0 }
 0xbbc   :  { %v1187_v2 = vadd.f32 %v2294_v61, %v1186_v1  ;;  %v2572_v6 = vpop.f32.mrb[23].mxu0  ;;  %v1314_v7 = vmul.f32 0.35355338, %v1184_v63 }
 0xbbe   :  { %v1315_v8 = vmul.f32 0.35355338, %v1187_v2 }
 0xbc0   :  { %v1316_v9 = vpack.c.bf16 %v1315_v8, %v1314_v7 }
 0xbc1   :  { %v1245_v11 = vpop.f32.mrb[24].mxu0 }
 0xbc2   :  { %1428 = vrot.lane.b32.xlu0 %v1316_v9, %s2877_s18  ;;  %v2579_v12 = vpop.f32.mrb[25].mxu0  ;;  %v1246_v14 = vadd.f32 %v2302_v10, %v1245_v11 }
 0xbc3   :  { %v1248_v13 = vpop.f32.mrb[26].mxu0 }
 0xbc4   :  { %v1249_v16 = vadd.f32 %v2302_v10, %v1248_v13  ;;  %v2580_v17 = vpop.f32.mrb[27].mxu0 }
 0xbc6   :  { %v1317_v20 = vpack.c.bf16 %v1249_v16, %v1246_v14  ;;  %1676 = vrot.lane.b32.xlu0 %v1316_v9, %s2879_s22 }
 0xbc8   :  { %1431 = vrot.lane.b32.xlu1 %v1317_v20, %s2877_s18  ;;  %v1323_v21 = vsel %vm289_vm2, %v1317_v20, 0 }
 0xbc9   :  { %v1307_v25 = vpop.f32.mrb[28].mxu0  ;;  %2590 = vmatpush3.bf16.xpose.msra.mxu0 %v1323_v21 }
 0xbca   :  { %v2587_v3 = vpop.f32.mrb[29].mxu0  ;;  %2601 = vmatprep.subr.bf16.mxu0 %v2875_v18  ;;  %v1308_v28 = vadd.f32 %v2310_v23, %v1307_v25 }
 0xbcb   :  { %v1310_v27 = vpop.f32.mrb[30].mxu0 }
 0xbcc   :  { %v1311_v29 = vadd.f32 %v2310_v23, %v1310_v27  ;;  %1555 = vrot.lane.b32.xlu1 %v1317_v20, %s2878_s19  ;;  %v2588_v30 = vpop.f32.mrb[31].mxu0 }
 0xbce   :  { %v3227_v31 = vpack.c.bf16 %v1311_v29, %v1308_v28 }
 0xbd0   :  { %1553 = vrot.lane.b32.xlu1 %v1316_v9, %s2878_s19  ;;  %2592 = vmatmul.mubr.msk.bf16.vlgmr.msra.gmra.mrb[32].mxu0 %vm289_vm2, %v1316_v9 }
 0xbd1   :  { %2596 = vmatpush3.bf16.msra.mxu1 %v3227_v31  ;;  %2603 = vmatprep.mubr.msk.bf16.mxu0 %vm2876_vm1, %v2875_v18 }
 0xbd2   :  { %2607 = vmatprep.subr.bf16.mxu1 %v2875_v18 }
 0xbd4   :  { %1678 = vrot.lane.b32.xlu1 %v1317_v20, %s2879_s22 }
 0xc34   :  { %v1429_v33 = vpop.permute.xlu0 %1428 }
 0xc38   :  { %v1677_v37 = vpop.permute.xlu0 %1676 }
 0xc3a   :  { %v1432_v32 = vpop.permute.xlu1 %1431 }
 0xc3b   :  { %v1437_v15 = vsel %vm289_vm2, %v1432_v32, 0 }
 0xc3c   :  { %2602 = vmatpush3.bf16.xpose.msra.mxu0 %v1437_v15 }
 0xc3d   :  { %2613 = vmatprep.subr.bf16.mxu0 %v2875_v18 }
 0xc3e   :  { %v1556_v5 = vpop.permute.xlu1 %1555 }
 0xc3f   :  { %v1561_v19 = vsel %vm289_vm2, %v1556_v5, 0 }
 0xc42   :  { %v1554_v34 = vpop.permute.xlu1 %1553 }
 0xc43   :  { %2604 = vmatmul.mubr.msk.bf16.vlgmr.msra.gmra.mrb[36].mxu0 %vm289_vm2, %v1429_v33 }
 0xc44   :  { %2614 = vmatpush3.bf16.xpose.msra.mxu0 %v1561_v19  ;;  %2615 = vmatprep.mubr.msk.bf16.mxu0 %vm2876_vm1, %v2875_v18 }
 0xc45   :  { %2625 = vmatprep.subr.bf16.mxu0 %v2875_v18 }
 0xc46   :  { %v1679_v35 = vpop.permute.xlu1 %1678 }
 0xc47   :  { %v1684_v36 = vsel %vm289_vm2, %v1679_v35, 0 }
 0xc4b   :  { %2616 = vmatmul.mubr.msk.bf16.vlgmr.msra.gmra.mrb[40].mxu0 %vm289_vm2, %v1554_v34 }
 0xc4c   :  { %2626 = vmatpush3.bf16.xpose.msra.mxu0 %v1684_v36  ;;  %2627 = vmatprep.mubr.msk.bf16.mxu0 %vm2876_vm1, %v2875_v18 }
 0xc4d   :  { %2637 = vmatprep.subr.bf16.mxu0 %v2875_v18 }
 0xc53   :  { %2628 = vmatmul.mubr.msk.bf16.vlgmr.msra.gmra.mrb[44].mxu0 %vm289_vm2, %v1677_v37 }
 0xc54   :  { %2641 = vmatprep.mubr.msk.bf16.mxu0 %vm2876_vm1, %v2875_v18 }
 0xca3   :  { %v1359_v38 = vpop.f32.mrb[32].mxu0 }
 0xca4   :  { %v1360_v39 = vadd.f32 %v1359_v38, %v3019_v22  ;;  %v2593_v40 = vpop.f32.mrb[33].mxu0 }
 0xca5   :  { %v1362_v41 = vpop.f32.mrb[34].mxu0 }
 0xca6   :  { %v1366_v42 = vmul.f32 1.442695, %v1360_v39  ;;  %v1363_v43 = vadd.f32 %v1362_v41, %v3021_v24  ;;  %v2594_v44 = vpop.f32.mrb[35].mxu0 }
 0xca8   :  { %2790 = vpow2.f32 %v1366_v42  ;;  %v1368_v45 = vmul.f32 1.442695, %v1363_v43 }
 0xcaa   :  { %2792 = vpow2.f32 %v1368_v45 }
 0xcb2   :  { %v2791_v46 = vpop.eup %2790 }
 0xcb3   :  { %v1370_v47 = vsel %vm341_vm7, %v2791_v46, 0.0 }
 0xcb4   :  { %v2793_v48 = vpop.eup %2792  ;;  %1371 = vadd.xlane.f32.xlu1 %v1370_v47 }
 0xcb5   :  { %v1373_v49 = vsel %vm341_vm7, %v2793_v48, 0.0 }
 0xcb6   :  { %1374 = vadd.xlane.f32.xlu0 %v1373_v49 }
 0xcc5   :  { %1496 = vrot.lane.b32.xlu1 %v3227_v31, %s2877_s18 }
 0xd16   :  { %v1473_v50 = vpop.f32.mrb[36].mxu0 }
 0xd17   :  { %v1474_v51 = vadd.f32 %v1473_v50, %v3019_v22  ;;  %v2605_v52 = vpop.f32.mrb[37].mxu0 }
 0xd18   :  { %v1476_v53 = vpop.f32.mrb[38].mxu0 }
 0xd19   :  { %v1480_v54 = vmul.f32 1.442695, %v1474_v51  ;;  %v1477_v55 = vadd.f32 %v1476_v53, %v3021_v24  ;;  %v2606_v56 = vpop.f32.mrb[39].mxu0 }
 0xd1b   :  { %2794 = vpow2.f32 %v1480_v54  ;;  %v1482_v57 = vmul.f32 1.442695, %v1477_v55 }
 0xd1d   :  { %2796 = vpow2.f32 %v1482_v57 }
 0xd1e   :  { %v1597_v58 = vpop.f32.mrb[40].mxu0 }
 0xd1f   :  { %v1598_v59 = vadd.f32 %v1597_v58, %v3019_v22  ;;  %v2617_v60 = vpop.f32.mrb[41].mxu0 }
 0xd20   :  { %v1600_v61 = vpop.f32.mrb[42].mxu0 }
 0xd21   :  { %v1604_v62 = vmul.f32 1.442695, %v1598_v59  ;;  %v1601_v63 = vadd.f32 %v1600_v61, %v3021_v24  ;;  %v2618_v0 = vpop.f32.mrb[43].mxu0 }
 0xd22   :  { %v2726_v0 = vld [vmem:[%s3420_s2 + $0xc0] sm:$0xff]  }
 0xd23   :  { %2798 = vpow2.f32 %v1604_v62  ;;  %v1606_v1 = vmul.f32 1.442695, %v1601_v63  ;;  %2638 = vmatpush3.bf16.msra.mxu0 %v2726_v0  ;;  %v2734_v0 = vld [vmem:[%s3420_s2 + $0x100] sm:$0xff]  }
 0xd24   :  { %2639 = vmatprep.subr.bf16.mxu0 %v2875_v18 }
 0xd25   :  { %v2795_v2 = vpop.eup %2794  ;;  %2800 = vpow2.f32 %v1606_v1 }
 0xd26   :  { %v1720_v6 = vpop.f32.mrb[44].mxu0  ;;  %v1484_v7 = vsel %vm341_vm7, %v2795_v2, 0.0 }
 0xd27   :  { %v2797_v8 = vpop.eup %2796  ;;  %v1721_v9 = vadd.f32 %v1720_v6, %v3019_v22  ;;  %1485 = vadd.xlane.f32.xlu0 %v1484_v7  ;;  %v2629_v10 = vpop.f32.mrb[45].mxu0 }
 0xd28   :  { %v1723_v11 = vpop.f32.mrb[46].mxu0  ;;  %v1487_v16 = vsel %vm341_vm7, %v2797_v8, 0.0 }
 0xd29   :  { %v1727_v12 = vmul.f32 1.442695, %v1721_v9  ;;  %v1724_v13 = vadd.f32 %v1723_v11, %v3021_v24  ;;  %v2630_v14 = vpop.f32.mrb[47].mxu0 }
 0xd2b   :  { %2802 = vpow2.f32 %v1727_v12  ;;  %v1729_v17 = vmul.f32 1.442695, %v1724_v13  ;;  %1488 = vadd.xlane.f32.xlu0 %v1487_v16 }
 0xd2d   :  { %v2799_v20 = vpop.eup %2798  ;;  %2804 = vpow2.f32 %v1729_v17 }
 0xd2e   :  { %v1608_v21 = vsel %vm341_vm7, %v2799_v20, 0.0 }
 0xd2f   :  { %v2801_v23 = vpop.eup %2800  ;;  %1609 = vadd.xlane.f32.xlu1 %v1608_v21 }
 0xd30   :  { %v1611_v22 = vsel %vm341_vm7, %v2801_v23, 0.0 }
 0xd31   :  { %1612 = vadd.xlane.f32.xlu0 %v1611_v22 }
 0xd35   :  { %v2803_v25 = vpop.eup %2802 }
 0xd36   :  { %v1731_v3 = vsel %vm341_vm7, %v2803_v25, 0.0 }
 0xd37   :  { %v2805_v27 = vpop.eup %2804  ;;  %1732 = vadd.xlane.f32.xlu1 %v1731_v3 }
 0xd38   :  { %v1734_v24 = vsel %vm341_vm7, %v2805_v27, 0.0 }
 0xd39   :  { %1735 = vadd.xlane.f32.xlu0 %v1734_v24 }
 0xd41   :  { %v1372_v28 = vpop.xlane.xlu1 %1371 }
 0xd42   :  { %2806 = vrcp.f32 %v1372_v28 }
 0xd43   :  { %v1375_v29 = vpop.xlane.xlu0 %1374 }
 0xd44   :  { %2808 = vrcp.f32 %v1375_v29 }
 0xd45   :  { %v1497_v34 = vpop.permute.xlu1 %1496 }
 0xd48   :  { %1742 = vrot.lane.b32.xlu1 %v3227_v31, %s2879_s22 }
 0xd4c   :  { %v2807_v30 = vpop.eup %2806 }
 0xd4d   :  { %v1378_v15 = vmul.f32 %v2807_v30, %v2791_v46 }
 0xd4e   :  { %v2809_v32 = vpop.eup %2808 }
 0xd4f   :  { %v1379_v5 = vmul.f32 %v2809_v32, %v2793_v48  ;;  %1619 = vrot.lane.b32.xlu0 %v3227_v31, %s2878_s19 }
 0xd51   :  { %v1380_v33 = vpack.c.bf16 %v1379_v5, %v1378_v15 }
 0xd53   :  { %2598 = vmatmul.mubr.msk.bf16.vlgmr.msra.gmra.mrb[36].mxu1 %vm341_vm7, %v1380_v33 }
 0xd54   :  { %2608 = vmatpush3.bf16.msra.mxu1 %v1497_v34  ;;  %2609 = vmatprep.mubr.msk.bf16.mxu1 %vm2876_vm1, %v2875_v18 }
 0xd55   :  { %2619 = vmatprep.subr.bf16.mxu1 %v2875_v18 }
 0xdb4   :  { %v1486_v19 = vpop.xlane.xlu0 %1485 }
 0xdb5   :  { %2810 = vrcp.f32 %v1486_v19 }
 0xdb8   :  { %v1489_v35 = vpop.xlane.xlu0 %1488 }
 0xdb9   :  { %2812 = vrcp.f32 %v1489_v35 }
 0xdbc   :  { %v1610_v36 = vpop.xlane.xlu1 %1609 }
 0xdbd   :  { %2814 = vrcp.f32 %v1610_v36 }
 0xdbe   :  { %v1613_v37 = vpop.xlane.xlu0 %1612 }
 0xdbf   :  { %2816 = vrcp.f32 %v1613_v37  ;;  %v2811_v38 = vpop.eup %2810 }
 0xdc0   :  { %v1492_v39 = vmul.f32 %v2811_v38, %v2795_v2  ;;  %v2727_v2 = vld [vmem:[%s3420_s2 + $0xc8] sm:$0xff]  }
 0xdc1   :  { %2640 = vmatpush3.bf16.msra.mxu0 %v2727_v2  ;;  %v2736_v2 = vld [vmem:[%s3420_s2 + $0x110] sm:$0xff]  }
 0xdc2   :  { %2653 = vmatprep.subr.bf16.mxu0 %v2875_v18 }
 0xdc3   :  { %v2813_v31 = vpop.eup %2812 }
 0xdc4   :  { %v1493_v40 = vmul.f32 %v2813_v31, %v2797_v8  ;;  %v1733_v41 = vpop.xlane.xlu1 %1732 }
 0xdc5   :  { %2818 = vrcp.f32 %v1733_v41  ;;  %v2728_v41 = vld [vmem:[%s3420_s2 + $0xd0] sm:$0xff]  }
 0xdc6   :  { %v1736_v42 = vpop.xlane.xlu0 %1735  ;;  %v1494_v43 = vpack.c.bf16 %v1493_v40, %v1492_v39 }
 0xdc7   :  { %2820 = vrcp.f32 %v1736_v42  ;;  %v2815_v44 = vpop.eup %2814  ;;  %v2729_v42 = vld [vmem:[%s3420_s2 + $0xd8] sm:$0xff]  }
 0xdc8   :  { %2610 = vmatmul.mubr.msk.bf16.vlgmr.msra.gmra.mrb[40].mxu1 %vm341_vm7, %v1494_v43  ;;  %v1616_v48 = vmul.f32 %v2815_v44, %v2799_v20  ;;  %v1743_v51 = vpop.permute.xlu1 %1742 }
 0xdc9   :  { %v2817_v45 = vpop.eup %2816  ;;  %2621 = vmatprep.mubr.msk.bf16.mxu1 %vm2876_vm1, %v2875_v18 }
 0xdca   :  { %v1617_v46 = vmul.f32 %v2817_v45, %v2801_v23  ;;  %v1620_v47 = vpop.permute.xlu0 %1619 }
 0xdcb   :  { %2620 = vmatpush3.bf16.msra.mxu1 %v1620_v47 }
 0xdcc   :  { %2631 = vmatprep.subr.bf16.mxu1 %v2875_v18  ;;  %v1618_v49 = vpack.c.bf16 %v1617_v46, %v1616_v48 }
 0xdcf   :  { %v2819_v50 = vpop.eup %2818 }
 0xdd0   :  { %2622 = vmatmul.mubr.msk.bf16.vlgmr.msra.gmra.mrb[44].mxu1 %vm341_vm7, %v1618_v49  ;;  %v1739_v54 = vmul.f32 %v2819_v50, %v2803_v25 }
 0xdd1   :  { %v2821_v52 = vpop.eup %2820  ;;  %2632 = vmatpush3.bf16.msra.mxu1 %v1743_v51  ;;  %2633 = vmatprep.mubr.msk.bf16.mxu1 %vm2876_vm1, %v2875_v18  ;;  %v2330_v51 = vld [vmem:[%s3419_s1 + $0x1e] ss:$0 sm:$0xff] }
 0xdd2   :  { %v1740_v53 = vmul.f32 %v2821_v52, %v2805_v27  ;;  %2645 = vmatprep.subr.bf16.mxu1 %v2875_v18  ;;  %v2329_v27 = vld [vmem:[%s3419_s1 + $0x1d] ss:$0 sm:$0xff] }
 0xdd4   :  { %v1741_v55 = vpack.c.bf16 %v1740_v53, %v1739_v54 }
 0xdd8   :  { %2634 = vmatmul.mubr.msk.bf16.vlgmr.msra.gmra.mrb[48].mxu1 %vm341_vm7, %v1741_v55  ;;  %v2331_v55 = vld [vmem:[%s3419_s1 + $0x1f] ss:$0 sm:$0xff] }
 0xdd9   :  { %2649 = vmatprep.mubr.msk.bf16.mxu1 %vm2876_vm1, %v2875_v18  ;;  %2646 = vmatpush3.bf16.msra.mxu1 %v2728_v41 }
 0xdda   :  { %2647 = vmatprep.subr.bf16.mxu1 %v2875_v18 }
 0xddd   :  { %2648 = vmatpush3.bf16.msra.mxu1 %v2729_v42 }
 0xe26   :  { %v1418_v56 = vpop.f32.mrb[36].mxu1 }
 0xe27   :  { %1425 = vst.msk [vmem:[#allocation2] sm:$0xff] %vm289_vm2, %v1418_v56  ;;  %v2599_v57 = vpop.f32.mrb[37].mxu1 }
 0xe28   :  { %v1421_v58 = vpop.f32.mrb[38].mxu1 }
 0xe29   :  { %1426 = vst.msk [vmem:[#allocation2 + $0x8] sm:$0xff] %vm289_vm2, %v1421_v58  ;;  %v2600_v59 = vpop.f32.mrb[39].mxu1 }
 0xe9b   :  { %v1536_v60 = vpop.f32.mrb[40].mxu1 }
 0xe9c   :  { %1545 = vrot.lane.b32.xlu1 %v1536_v60, %s2881_s23  ;;  %v2611_v61 = vpop.f32.mrb[41].mxu1  ;;  %v2730_v60 = vld [vmem:[%s3420_s2 + $0xe0] sm:$0xff]  }
 0xe9d   :  { %v1539_v62 = vpop.f32.mrb[42].mxu1  ;;  %v2731_v61 = vld [vmem:[%s3420_s2 + $0xe8] sm:$0xff]  }
 0xe9e   :  { %v2612_v63 = vpop.f32.mrb[43].mxu1 }
 0xe9f   :  { %v2733_v63 = vld [vmem:[%s3420_s2 + $0xf8] sm:$0xff]  }
 0xea0   :  { %1547 = vrot.lane.b32.xlu1 %v1539_v62, %s2881_s23  ;;  %v2732_v62 = vld [vmem:[%s3420_s2 + $0xf0] sm:$0xff]  }
 0xea3   :  { %v1659_v1 = vpop.f32.mrb[44].mxu1 }
 0xea4   :  { %1668 = vrot.lane.b32.xlu0 %v1659_v1, %s2882_s3  ;;  %v2623_v6 = vpop.f32.mrb[45].mxu1  ;;  %v2735_v1 = vld [vmem:[%s3420_s2 + $0x108] sm:$0xff]  }
 0xea5   :  { %v1662_v7 = vpop.f32.mrb[46].mxu1  ;;  %v2737_v6 = vld [vmem:[%s3420_s2 + $0x118] sm:$0xff]  }
 0xea6   :  { %1670 = vrot.lane.b32.xlu1 %v1662_v7, %s2882_s3  ;;  %v2624_v8 = vpop.f32.mrb[47].mxu1  ;;  %v2336_v7 = vld [vmem:[%s3419_s1 + $0x20] ss:$0 sm:$0xff]  ;;  %s2367_s3 = sld [smem:[#allocation3 + $0x1]] }
 0xeab   :  { %v1782_v9 = vpop.f32.mrb[48].mxu1 }
 0xeac   :  { %1791 = vrot.lane.b32.xlu0 %v1782_v9, %s2883_s27  ;;  %v2635_v10 = vpop.f32.mrb[49].mxu1  ;;  %s2243_s11 = scalar_lea.vmem [#allocation2], %s2367_s3 }
 0xead   :  { %v1785_v11 = vpop.f32.mrb[50].mxu1 }
 0xeae   :  { %1793 = vrot.lane.b32.xlu1 %v1785_v11, %s2883_s27  ;;  %v2636_v12 = vpop.f32.mrb[51].mxu1  ;;  %s2110_s27 = sld [smem:[#allocation3]] }
 0xeb4   :  { %s2111_s12 = scalar_lea.vmem [#allocation2], %s2110_s27 }
 0xf0e   :  { %v1546_v13 = vpop.permute.xlu1 %1545 }
 0xf0f   :  { %1551 = vst.msk [vmem:[#allocation2] sm:$0xff] %vm523_vm8, %v1546_v13 }
 0xf12   :  { %v1548_v14 = vpop.permute.xlu1 %1547 }
 0xf13   :  { %1552 = vst.msk [vmem:[#allocation2 + $0x8] sm:$0xff] %vm523_vm8, %v1548_v14 }
 0xf16   :  { %v1669_v16 = vpop.permute.xlu0 %1668 }
 0xf17   :  { %1674 = vst.msk [vmem:[#allocation2] sm:$0xff] %vm647_vm9, %v1669_v16 }
 0xf18   :  { %v1671_v17 = vpop.permute.xlu1 %1670 }
 0xf19   :  { %1675 = vst.msk [vmem:[#allocation2 + $0x8] sm:$0xff] %vm647_vm9, %v1671_v17 }
 0xf1e   :  { %v1792_v20 = vpop.permute.xlu0 %1791 }
 0xf1f   :  { %1797 = vst.msk [vmem:[#allocation2] sm:$0xff] %vm771_vm10, %v1792_v20 }
 0xf20   :  { %v1794_v21 = vpop.permute.xlu1 %1793 }
 0xf21   :  { %1798 = vst.msk [vmem:[#allocation2 + $0x8] sm:$0xff] %vm771_vm10, %v1794_v21 }
 0xf26   :  { %v1799_v23 = vld [vmem:[#allocation2] sm:$0xff] }
 0xf28   :  { %v1800_v22 = vld [vmem:[#allocation2 + $0x8] sm:$0xff] }
 0xf29   :  { %v1801_v25 = vpack.c.bf16 %v1800_v22, %v1799_v23 }
 0xf2b   :  { %2642 = vmatmul.mubr.msk.bf16.vlgmr.msra.gmra.mrb[48].mxu0 %vm54_vm0, %v1801_v25 }
 0xf2c   :  { %2669 = vmatprep.mubr.msk.bf16.mxu0 %vm2876_vm1, %v2875_v18  ;;  %2654 = vmatpush3.bf16.msra.mxu0 %v2730_v60 }
 0xf2d   :  { %2655 = vmatprep.subr.bf16.mxu0 %v2875_v18 }
 0xf30   :  { %2656 = vmatpush3.bf16.msra.mxu0 %v2731_v61 }
 0xf31   :  { %2657 = vmatprep.subr.bf16.mxu0 %v2875_v18 }
 0xf34   :  { %2658 = vmatpush3.bf16.msra.mxu0 %v2732_v62 }
 0xf35   :  { %2659 = vmatprep.subr.bf16.mxu0 %v2875_v18 }
 0xf38   :  { %2660 = vmatpush3.bf16.msra.mxu0 %v2733_v63 }
 0xf39   :  { %2661 = vmatprep.subr.bf16.mxu0 %v2875_v18 }
 0xf3c   :  { %2662 = vmatpush3.bf16.msra.mxu0 %v2734_v0 }
 0xf3d   :  { %2663 = vmatprep.subr.bf16.mxu0 %v2875_v18 }
 0xf40   :  { %2664 = vmatpush3.bf16.msra.mxu0 %v2735_v1 }
 0xf41   :  { %2665 = vmatprep.subr.bf16.mxu0 %v2875_v18 }
 0xf44   :  { %2666 = vmatpush3.bf16.msra.mxu0 %v2736_v2 }
 0xf45   :  { %2667 = vmatprep.subr.bf16.mxu0 %v2875_v18 }
 0xf48   :  { %2668 = vmatpush3.bf16.msra.mxu0 %v2737_v6 }
 0xffe   :  { %v1855_v3 = vpop.f32.mrb[48].mxu0 }
 0xfff   :  { %v1862_v24 = vadd.f32 %v1855_v3, %v3160_v26  ;;  %v2643_v28 = vpop.f32.mrb[49].mxu0 }
0x1000   :  { %v1858_v29 = vpop.f32.mrb[50].mxu0 }
0x1001   :  { %v3317_v30 = vadd.f32 %v2329_v27, %v1862_v24  ;;  %v1863_v32 = vadd.f32 %v1858_v29, %v3163_v4  ;;  %v2644_v15 = vpop.f32.mrb[51].mxu0 }
0x1002   :  { %v2366_v15 = vld [vmem:[%s3419_s1 + $0x21] ss:$0 sm:$0xff] }
0x1003   :  { %v3320_v5 = vadd.f32 %v2329_v27, %v1863_v32  ;;  %v1873_v33 = vsel %vm54_vm0, %v3317_v30, 0.0 }
0x1004   :  { %1874 = vadd.xlane.f32.xlu0 %v1873_v33 }
0x1005   :  { %v1876_v34 = vsel %vm54_vm0, %v3320_v5, 0.0 }
0x1006   :  { %1877 = vadd.xlane.f32.xlu1 %v1876_v34 }
0x1091   :  { %v1875_v19 = vpop.xlane.xlu0 %1874 }
0x1092   :  { %v1879_v35 = vmul.f32 0.03125, %v1875_v19 }
0x1093   :  { %v1878_v26 = vpop.xlane.xlu1 %1877 }
0x1094   :  { %v1881_v36 = vsub.f32 %v3317_v30, %v1879_v35  ;;  %v1880_v37 = vmul.f32 0.03125, %v1878_v26 }
0x1096   :  { %v1882_v38 = vsub.f32 %v3320_v5, %v1880_v37  ;;  %v1883_v4 = vmul.f32 %v1881_v36, %v1881_v36 }
0x1098   :  { %v1885_v31 = vsel %vm54_vm0, %v1883_v4, 0.0  ;;  %v1884_v39 = vmul.f32 %v1882_v38, %v1882_v38 }
0x1099   :  { %1886 = vadd.xlane.f32.xlu0 %v1885_v31 }
0x109a   :  { %v1888_v40 = vsel %vm54_vm0, %v1884_v39, 0.0 }
0x109d   :  { %1889 = vadd.xlane.f32.xlu0 %v1888_v40 }
0x1126   :  { %v1887_v43 = vpop.xlane.xlu0 %1886 }
0x1127   :  { %v1891_v44 = vmul.f32 0.03125, %v1887_v43  ;;  %v2148_v43 = vld [vmem:[%s3419_s1 + $0x30] sm:$0xff] }
0x1129   :  { %v1893_v45 = vadd.f32 1e-05, %v1891_v44  ;;  %v2149_v44 = vld [vmem:[%s3419_s1 + $0x38] sm:$0xff] }
0x112a   :  { %v1890_v46 = vpop.xlane.xlu0 %1889 }
0x112b   :  { %2822 = vrsqrt.f32 %v1893_v45  ;;  %v1892_v47 = vmul.f32 0.03125, %v1890_v46  ;;  %v2685_v45 = vpack.c.bf16 %v2149_v44, %v2148_v43  ;;  %v2884_v46 = vmov 0.0|0.0  }
0x112c   :  { %2684 = vmatprep.subr.bf16.mxu0 %v2884_v46 }
0x112d   :  { %v1894_v48 = vadd.f32 1e-05, %v1892_v47  ;;  %v2150_v47 = vld [vmem:[%s3419_s1 + $0x40] sm:$0xff] }
0x112f   :  { %2824 = vrsqrt.f32 %v1894_v48  ;;  %v2151_v48 = vld [vmem:[%s3419_s1 + $0x48] sm:$0xff] }
0x1135   :  { %v2823_v49 = vpop.eup %2822 }
0x1136   :  { %v1897_v50 = vmul.f32 %v2823_v49, %v1881_v36  ;;  %v2688_v49 = vpack.c.bf16 %v2151_v48, %v2150_v47 }
0x1138   :  { %v1903_v53 = vmul.f32 %v2330_v51, %v1897_v50 }
0x1139   :  { %v2825_v52 = vpop.eup %2824 }
0x113a   :  { %v1898_v54 = vmul.f32 %v2825_v52, %v1882_v38  ;;  %v1909_v57 = vadd.f32 %v2331_v55, %v1903_v53 }
0x113c   :  { %v1904_v56 = vmul.f32 %v2330_v51, %v1898_v54  ;;  %v2369_v54 = vld [vmem:[%s3419_s1 + $0x28] ss:$0 sm:$0xff] }
0x113e   :  { %v1910_v58 = vadd.f32 %v2331_v55, %v1904_v56  ;;  %v2370_v56 = vld [vmem:[%s3419_s1 + $0x29] ss:$0 sm:$0xff] }
0x1140   :  { %v1911_v59 = vpack.c.bf16 %v1910_v58, %v1909_v57 }
0x1142   :  { %2650 = vmatmul.mubr.msk.bf16.vlgmr.msra.gmra.mrb[52].mxu1 %vm54_vm0, %v1911_v59 }
0x1215   :  { %v1970_v8 = vpop.f32.mrb[52].mxu1 }
0x1216   :  { %v1971_v9 = vadd.f32 %v2336_v7, %v1970_v8  ;;  %v2651_v10 = vpop.f32.mrb[53].mxu1 }
0x1217   :  { %v1973_v11 = vpop.f32.mrb[54].mxu1 }
0x1218   :  { %v2340_v12 = vmul.f32 -1.702, %v1971_v9  ;;  %v1974_v13 = vadd.f32 %v2336_v7, %v1973_v11  ;;  %v2652_v14 = vpop.f32.mrb[55].mxu1 }
0x121a   :  { %v1981_v16 = vmul.f32 1.442695, %v2340_v12  ;;  %v2341_v17 = vmul.f32 -1.702, %v1974_v13 }
0x121c   :  { %2826 = vpow2.f32 %v1981_v16  ;;  %v1983_v20 = vmul.f32 1.442695, %v2341_v17 }
0x121e   :  { %2828 = vpow2.f32 %v1983_v20 }
0x1226   :  { %v2827_v21 = vpop.eup %2826 }
0x1227   :  { %v1985_v23 = vadd.f32 1.0, %v2827_v21 }
0x1228   :  { %v2829_v22 = vpop.eup %2828 }
0x1229   :  { %2830 = vrcp.f32 %v1985_v23  ;;  %v1986_v25 = vadd.f32 1.0, %v2829_v22 }
0x122b   :  { %2832 = vrcp.f32 %v1986_v25 }
0x1233   :  { %v2831_v3 = vpop.eup %2830 }
0x1234   :  { %v1991_v24 = vmul.f32 %v2831_v3, %v1971_v9 }
0x1235   :  { %v2833_v27 = vpop.eup %2832 }
0x1236   :  { %v1992_v28 = vmul.f32 %v2833_v27, %v1974_v13 }
0x1238   :  { %v1993_v29 = vpack.c.bf16 %v1992_v28, %v1991_v24 }
0x123a   :  { %2670 = vmatmul.mubr.bf16.vlgmr.msra.gmra.mrb[52].mxu0 %v1993_v29 }
0x123b   :  { %2681 = vmatprep.mubr.msk.f32.mxu0 %vm2876_vm1, %v2875_v18  ;;  %2686 = vmatpush3.bf16.msra.mxu0 %v2685_v45 }
0x123c   :  { %2687 = vmatprep.subr.bf16.mxu0 %v2884_v46 }
0x123f   :  { %2689 = vmatpush3.bf16.msra.mxu0 %v2688_v49 }
0x130d   :  { %v2092_v32 = vpop.f32.mrb[52].mxu0 }
0x130e   :  { %v2099_v33 = vadd.f32 %v2092_v32, %v3317_v30  ;;  %v2671_v34 = vpop.f32.mrb[53].mxu0 }
0x130f   :  { %v2095_v19 = vpop.f32.mrb[54].mxu0 }
0x1310   :  { %v2106_v35 = vadd.f32 %v2366_v15, %v2099_v33  ;;  %v2100_v26 = vadd.f32 %v2095_v19, %v3320_v5  ;;  %v2672_v36 = vpop.f32.mrb[55].mxu0 }
0x1312   :  { %2108 = vst.msk [vmem:[#allocation2] sm:$0xff] %vm54_vm0, %v2106_v35  ;;  %v2107_v37 = vadd.f32 %v2366_v15, %v2100_v26 }
0x1314   :  { %2109 = vst.msk [vmem:[#allocation2 + $0x8] sm:$0xff] %vm54_vm0, %v2107_v37 }
0x131b   :  { %v2368_v18 = vld [vmem:[%s2243_s11 + $0x8] sm:$0x1]  ;;  %v2112_v30 = vld [vmem:[%s2111_s12] sm:$0x1] }
0x131c   :  { %v2118_v38 = vrot.slane %v2368_v18, 7 }
0x131e   :  { %v2121_v4 = vsel %vm2120_vm11, %v2112_v30, %v2118_v38 }
0x131f   :  { %v2125_v31 = vsel %vm2124_vm12, %v2121_v4, 0.0 }
0x1320   :  { %2126 = vadd.xlane.f32.xlu0 %v2125_v31 }
0x13ad   :  { %v2127_v39 = vpop.xlane.xlu0 %2126 }
0x13ae   :  { %v2128_v5 = vmul.f32 0.03125, %v2127_v39 }
0x13b0   :  { %v2129_v40 = vsub.f32 %v2121_v4, %v2128_v5 }
0x13b2   :  { %v2130_v41 = vmul.f32 %v2129_v40, %v2129_v40 }
0x13b4   :  { %v2131_v42 = vsel %vm2124_vm12, %v2130_v41, 0.0 }
0x13b5   :  { %2132 = vadd.xlane.f32.xlu1 %v2131_v42 }
0x1442   :  { %v2133_v50 = vpop.xlane.xlu1 %2132 }
0x1443   :  { %v2134_v51 = vmul.f32 0.03125, %v2133_v50 }
0x1445   :  { %v2135_v52 = vadd.f32 1e-05, %v2134_v51 }
0x1447   :  { %2834 = vrsqrt.f32 %v2135_v52 }
0x1451   :  { %v2835_v53 = vpop.eup %2834 }
0x1452   :  { %v2137_v55 = vmul.f32 %v2835_v53, %v2129_v40 }
0x1454   :  { %v2142_v57 = vmul.f32 %v2369_v54, %v2137_v55 }
0x1456   :  { %v2147_v58 = vadd.f32 %v2370_v56, %v2142_v57 }
0x1458   :  { %2682 = vmatmul.mubr.msk.f32.vlgmr.msra.gmra.mrb[56].mxu0 %vm54_vm0, %v2147_v58 }
0x152b   :  { %v2221_v59 = vpop.f32.mrb[56].mxu0 }
0x152c   :  { %v2683_v60 = vpop.f32.mrb[57].mxu0  ;;  %2226 = vst.msk [vmem:[#allocation6] sm:$0x3] %vm2225_vm13, %v2221_v59 }
0x152d   :  { %2859 = shalt.err (!%p2856_p9)
}
0x152e   :  { %s2860_s7 = scalar_lea.hbm %s3422_s4, 32 }
0x152f   :  { %p2861_p10 = scmp.ne.s32.totalorder %s3422_s4, %s2860_s7  ;;  %p2864_p11 = scmp.lt.u32.totalorder %s2860_s7, %s3422_s4 }
0x1531   :  { %p2866_p12 = pnand %p2864_p11, %p2861_p10 }
0x1533   :  { %2869 = shalt.err (!%p2866_p12)
}
0x1534   :  { %2236 = dma.vmem_to_hbm [thread:$0]  %s2234_s30, 32, %s3422_s4, [#allocation4]  }
0x1535   :  { %2872 = dma.done.wait [#allocation4], 32  }
0x1536   :  { %2873 = vsyncadd [#allocation4], 4294967264 }
0x1537   :  { %2240 = vsyncpa [#allocation4], 1 }
0x1538   :  { %2241 = vsyncpa [#allocation5], 1 }

</bundles_post_ra>
